<compile_context>
chip_gen: v7x
topology: tpu7x:2x2x1
jax: 0.10.0
libtpu: 0.0.40
codegen_flags: <defaults>
</compile_context>

<pallas_src>
import jax
import jax.numpy as jnp
from jax.experimental import pallas as pl
from jax.experimental.pallas import tpu as pltpu

KH = KW = 3
C_OUT = 192            # Conv2d(2, 192, ...) -> residual broadcast requires C == 192
TARGET_LANES = 4096    # spatial tile target (keeps double-buffered VMEM ~13 MiB)


def _round_up(x, m):
    return ((x + m - 1) // m) * m


def _pick_tiles(hw, w):
    """Spatial tile T (multiple of the halo width G), halo width G (>= W+1, lane
    aligned), and the padded flat-spatial size (multiple of T)."""
    g = _round_up(w + 1, 128)
    hw_g = _round_up(hw, g)
    nblk = hw_g // g
    max_blocks = max(TARGET_LANES // g, 1)
    if nblk <= max_blocks:
        blocks = nblk
    else:
        # prefer an exact divisor (no end padding) as long as the tile stays large
        divs = [b for b in range(max_blocks, max_blocks // 2, -1) if nblk % b == 0]
        blocks = divs[0] if divs else max_blocks
    t = blocks * g
    return t, g, _round_up(hw_g, t)


def _make_kernel(W, T, G, n_t, c_in):
    c_chunk = 64 if C_OUT % 64 == 0 else C_OUT

    def kernel(x_ref, xl_ref, xr_ref, m_ref, w_ref, o_ref, ws_ref, tap_ref):
        t = pl.program_id(1)

        # ---- fused "pass 1": per-position channel mean / max map window --------
        # ws[:, j] <-> flat spatial position (t*T - G + j)
        xm = x_ref[0].astype(jnp.float32)                          # (C, T)
        ws_ref[0:1, G:G + T] = jnp.sum(xm, axis=0, keepdims=True) * (1.0 / c_in)
        ws_ref[1:2, G:G + T] = jnp.max(xm, axis=0, keepdims=True)

        # Halo maps from the neighbor x blocks.  Out-of-range halos (first / last
        # tile; their index_map is clamped) are zeroed so the row-boundary conv
        # taps see Conv2d's zero padding.
        lv = (t > 0).astype(jnp.float32)
        xl = xl_ref[0].astype(jnp.float32)                         # (C, G)
        ws_ref[0:1, 0:G] = jnp.sum(xl, axis=0, keepdims=True) * (lv / c_in)
        ws_ref[1:2, 0:G] = jnp.max(xl, axis=0, keepdims=True) * lv

        rv = (t < n_t - 1).astype(jnp.float32)
        xr = xr_ref[0].astype(jnp.float32)                         # (C, G)
        ws_ref[0:1, G + T:2 * G + T] = jnp.sum(xr, axis=0, keepdims=True) * (rv / c_in)
        ws_ref[1:2, G + T:2 * G + T] = jnp.max(xr, axis=0, keepdims=True) * rv

        # ---- tap matrix: rows (2p, 2p+1) = (avg, max) taps for offset p = kh*3+kw.
        # Column-boundary masking: dx=-1 taps are zero where the output column is 0,
        # dx=+1 taps are zero where it is W-1; row-boundary taps hit the zeroed halo.
        mask_l = m_ref[0:1, :]
        mask_r = m_ref[1:2, :]
        for kh in range(KH):
            for kw in range(KW):
                dy, dx = kh - 1, kw - 1
                off = dy * W + dx
                p = kh * KW + kw
                win = ws_ref[:, G + off:G + off + T]               # (2, T)
                if dx == -1:
                    win = win * mask_l
                elif dx == 1:
                    win = win * mask_r
                tap_ref[2 * p:2 * p + 2, :] = win

        # ---- 3x3 conv == one small MXU matmul + fused sigmoid-gate residual,
        #      chunked over output channels to bound vreg pressure at large T.
        # (If exact f32 Conv2d parity is required, add precision=HIGHEST here.)
        for c0 in range(0, C_OUT, c_chunk):
            scale = jnp.dot(w_ref[c0:c0 + c_chunk, :], tap_ref[...],
                            preferred_element_type=jnp.float32)    # (cc, T)
            xv = x_ref[0, c0:c0 + c_chunk, :].astype(jnp.float32)
            o_ref[0, c0:c0 + c_chunk, :] = (
                xv * jax.nn.sigmoid(scale) + xv).astype(o_ref.dtype)

    return kernel


def spatial_attention(x_nchw, w_conv):
    """x_nchw: (N, 192, H, W); w_conv: (192, 2, 3, 3) PyTorch OIHW. Returns NCHW."""
    N, C, H, W = x_nchw.shape
    assert C == C_OUT, "SpatialAttention residual broadcast requires C == 192"
    HW = H * W
    T, G, HW_pad = _pick_tiles(HW, W)
    n_t = HW_pad // T
    n_g = T // G
    n_g_tot = HW_pad // G

    x_flat = x_nchw.reshape(N, C, HW)            # free reshape, no transpose
    if HW_pad != HW:
        # Zero padding preserves conv semantics (mean/max of all-zero columns is 0,
        # exactly the conv's zero padding), and padded outputs are sliced off below.
        # TODO(synk): handle the ragged last tile in-kernel to avoid this x copy.
        x_flat = jnp.pad(x_flat, ((0, 0), (0, 0), (0, HW_pad - HW)))

    # Tiny (2, HW_pad) column-boundary mask: row 0 zeroes w==0 (dx=-1 taps),
    # row 1 zeroes w==W-1 (dx=+1 taps).  ~1% of the x tile's DMA per step.
    col = jnp.arange(HW_pad, dtype=jnp.int32) % W
    colmask = jnp.stack([(col != 0), (col != W - 1)]).astype(jnp.float32)

    # Conv weight (O, I, KH, KW) -> (O, 18), tap-major / channel-minor columns.
    w_mat = jnp.transpose(w_conv, (0, 2, 3, 1)).reshape(C_OUT, KH * KW * 2)
    w_mat = w_mat.astype(jnp.float32)

    kernel = _make_kernel(W, T, G, n_t, C)
    out_flat = pl.pallas_call(
        kernel,
        out_shape=jax.ShapeDtypeStruct((N, C, HW_pad), x_flat.dtype),
        grid_spec=pltpu.PrefetchScalarGridSpec(
            num_scalar_prefetch=0,
            grid=(N, n_t),
            in_specs=[
                pl.BlockSpec((1, C, T), lambda n, t: (n, 0, t)),                # x tile
                pl.BlockSpec((1, C, G),                                         # left x halo
                             lambda n, t: (n, 0, jnp.maximum(t * n_g - 1, 0))),
                pl.BlockSpec((1, C, G),                                         # right x halo
                             lambda n, t: (n, 0, jnp.minimum((t + 1) * n_g,
                                                             n_g_tot - 1))),
                pl.BlockSpec((2, T), lambda n, t: (0, t)),                      # column mask
                pl.BlockSpec((C_OUT, KH * KW * 2), lambda n, t: (0, 0)),        # conv weight
            ],
            out_specs=pl.BlockSpec((1, C, T), lambda n, t: (n, 0, t)),
            scratch_shapes=[
                pltpu.VMEM((2, T + 2 * G), jnp.float32),      # (avg, max) map window
                pltpu.VMEM((2 * KH * KW, T), jnp.float32),    # (18, T) tap matrix
            ]),
        compiler_params=pltpu.CompilerParams(
            dimension_semantics=("parallel", "parallel"),
            vmem_limit_bytes=32 * 1024 * 1024),
    )(x_flat, x_flat, x_flat, colmask, w_mat)

    if HW_pad != HW:
        out_flat = out_flat[:, :, :HW]
    return out_flat.reshape(N, C, H, W)


def spatial_attention_ref(x, w):
    """Pure-JAX reference matching the PyTorch module (NCHW)."""
    avg = jnp.mean(x, axis=1, keepdims=True)
    mx = jnp.max(x, axis=1, keepdims=True)
    s = jnp.concatenate([avg, mx], axis=1)
    scale = jax.lax.conv_general_dilated(
        s, w, window_strides=(1, 1), padding=((1, 1), (1, 1)),
        dimension_numbers=("NCHW", "OIHW", "NCHW"),
        precision=jax.lax.Precision.HIGHEST)
    return x * jax.nn.sigmoid(scale) + x


if __name__ == "__main__":
    N, C, H, W = 2, 192, 16, 16   # C must equal the conv's 192 output channels
    key = jax.random.PRNGKey(0)
    kx, kw = jax.random.split(key)
    x = jax.random.normal(kx, (N, C, H, W), jnp.float32)
    w = jax.random.normal(kw, (C_OUT, 2, KH, KW), jnp.float32) * 0.1

    out = jax.block_until_ready(spatial_attention(x, w))
    ref = jax.block_until_ready(spatial_attention_ref(x, w))

    assert out.shape == (N, C, H, W)
    max_err = float(jnp.max(jnp.abs(out - ref)))
    # tolerance covers the MXU's default reduced-precision f32 matmul passes
    assert jnp.allclose(out, ref, rtol=1e-2, atol=1e-2), max_err
    print("KERNEL_OK")
</pallas_src>

<mosaic_0001>
module attributes {stable_mosaic.version = 11 : i64} {
  func.func @kernel(%arg0: i32, %arg1: i32, %arg2: memref<1x192x256xf32, #tpu.memory_space<vmem>>, %arg3: memref<1x192x128xf32, #tpu.memory_space<vmem>>, %arg4: memref<1x192x128xf32, #tpu.memory_space<vmem>>, %arg5: memref<2x256xf32, #tpu.memory_space<vmem>>, %arg6: memref<192x18xf32, #tpu.memory_space<vmem>>, %arg7: memref<1x192x256xf32, #tpu.memory_space<vmem>>, %arg8: memref<2x512xf32, #tpu.memory_space<vmem>>, %arg9: memref<18x256xf32, #tpu.memory_space<vmem>>) attributes {dimension_semantics = [#tpu.dimension_semantics<parallel>, #tpu.dimension_semantics<parallel>], iteration_bounds = array<i64: 2, 1>, scalar_prefetch = 0 : i64, scratch_operands = 2 : i64, tpu.core_type = #tpu.core_type<tc>, window_params = [{transform_indices = @transform_0, window_bounds = array<i64: 1, 192, 256>}, {transform_indices = @transform_1, window_bounds = array<i64: 1, 192, 128>}, {transform_indices = @transform_2, window_bounds = array<i64: 1, 192, 128>}, {transform_indices = @transform_3, window_bounds = array<i64: 2, 256>}, {pipeline_mode = #tpu.pipeline_mode<synchronous>, transform_indices = @transform_4, window_bounds = array<i64: 192, 18>}, {transform_indices = @transform_5, window_bounds = array<i64: 1, 192, 256>}]} {
    %c0 = arith.constant 0 : index
    %c0_0 = arith.constant 0 : index
    %c0_1 = arith.constant 0 : index
    %0 = vector.load %arg2[%c0, %c0_0, %c0_1] : memref<1x192x256xf32, #tpu.memory_space<vmem>>, vector<1x192x256xf32>
    %1 = vector.shape_cast %0 : vector<1x192x256xf32> to vector<192x256xf32>
    %cst = arith.constant dense<0.000000e+00> : vector<256xf32>
    %2 = vector.multi_reduction <add>, %1, %cst [0] : vector<192x256xf32> to vector<256xf32>
    %3 = vector.shape_cast %2 : vector<256xf32> to vector<1x256xf32>
    %cst_2 = arith.constant 0.00520833349 : f32
    %4 = vector.broadcast %cst_2 : f32 to vector<1x256xf32>
    %5 = arith.mulf %3, %4 : vector<1x256xf32>
    %c0_3 = arith.constant 0 : index
    %c128 = arith.constant 128 : index
    %6 = vector.load %arg8[%c0_3, %c128] : memref<2x512xf32, #tpu.memory_space<vmem>>, vector<1x256xf32>
    tpu.vector_store %arg8[%c0_3, %c128], %5 {strides = array<i32>} : memref<2x512xf32, #tpu.memory_space<vmem>>, vector<1x256xf32>,
    %cst_4 = arith.constant dense<0xFF800000> : vector<256xf32>
    %7 = vector.multi_reduction <maximumf>, %1, %cst_4 [0] : vector<192x256xf32> to vector<256xf32>
    %8 = vector.shape_cast %7 : vector<256xf32> to vector<1x256xf32>
    %c1 = arith.constant 1 : index
    %c128_5 = arith.constant 128 : index
    %9 = vector.load %arg8[%c1, %c128_5] : memref<2x512xf32, #tpu.memory_space<vmem>>, vector<1x256xf32>
    tpu.vector_store %arg8[%c1, %c128_5], %8 {strides = array<i32>} : memref<2x512xf32, #tpu.memory_space<vmem>>, vector<1x256xf32>,
    %c0_i32 = arith.constant 0 : i32
    %10 = arith.cmpi sgt, %arg1, %c0_i32 : i32
    %11 = arith.extui %10 : i1 to i32
    %12 = arith.sitofp %11 : i32 to f32
    %c0_6 = arith.constant 0 : index
    %c0_7 = arith.constant 0 : index
    %c0_8 = arith.constant 0 : index
    %13 = vector.load %arg3[%c0_6, %c0_7, %c0_8] : memref<1x192x128xf32, #tpu.memory_space<vmem>>, vector<1x192x128xf32>
    %14 = vector.shape_cast %13 : vector<1x192x128xf32> to vector<192x128xf32>
    %cst_9 = arith.constant dense<0.000000e+00> : vector<128xf32>
    %15 = vector.multi_reduction <add>, %14, %cst_9 [0] : vector<192x128xf32> to vector<128xf32>
    %16 = vector.shape_cast %15 : vector<128xf32> to vector<1x128xf32>
    %cst_10 = arith.constant 1.920000e+02 : f32
    %17 = arith.divf %12, %cst_10 : f32
    %18 = vector.broadcast %17 : f32 to vector<1x128xf32>
    %19 = arith.mulf %16, %18 : vector<1x128xf32>
    %c0_11 = arith.constant 0 : index
    %c0_12 = arith.constant 0 : index
    %20 = vector.load %arg8[%c0_11, %c0_12] : memref<2x512xf32, #tpu.memory_space<vmem>>, vector<1x128xf32>
    tpu.vector_store %arg8[%c0_11, %c0_12], %19 {strides = array<i32>} : memref<2x512xf32, #tpu.memory_space<vmem>>, vector<1x128xf32>,
    %cst_13 = arith.constant dense<0xFF800000> : vector<128xf32>
    %21 = vector.multi_reduction <maximumf>, %14, %cst_13 [0] : vector<192x128xf32> to vector<128xf32>
    %22 = vector.shape_cast %21 : vector<128xf32> to vector<1x128xf32>
    %23 = vector.broadcast %12 : f32 to vector<1x128xf32>
    %24 = arith.mulf %22, %23 : vector<1x128xf32>
    %c1_14 = arith.constant 1 : index
    %c0_15 = arith.constant 0 : index
    %25 = vector.load %arg8[%c1_14, %c0_15] : memref<2x512xf32, #tpu.memory_space<vmem>>, vector<1x128xf32>
    tpu.vector_store %arg8[%c1_14, %c0_15], %24 {strides = array<i32>} : memref<2x512xf32, #tpu.memory_space<vmem>>, vector<1x128xf32>,
    %c0_i32_16 = arith.constant 0 : i32
    %26 = arith.cmpi slt, %arg1, %c0_i32_16 : i32
    %27 = arith.extui %26 : i1 to i32
    %28 = arith.sitofp %27 : i32 to f32
    %c0_17 = arith.constant 0 : index
    %c0_18 = arith.constant 0 : index
    %c0_19 = arith.constant 0 : index
    %29 = vector.load %arg4[%c0_17, %c0_18, %c0_19] : memref<1x192x128xf32, #tpu.memory_space<vmem>>, vector<1x192x128xf32>
    %30 = vector.shape_cast %29 : vector<1x192x128xf32> to vector<192x128xf32>
    %cst_20 = arith.constant dense<0.000000e+00> : vector<128xf32>
    %31 = vector.multi_reduction <add>, %30, %cst_20 [0] : vector<192x128xf32> to vector<128xf32>
    %32 = vector.shape_cast %31 : vector<128xf32> to vector<1x128xf32>
    %cst_21 = arith.constant 1.920000e+02 : f32
    %33 = arith.divf %28, %cst_21 : f32
    %34 = vector.broadcast %33 : f32 to vector<1x128xf32>
    %35 = arith.mulf %32, %34 : vector<1x128xf32>
    %c0_22 = arith.constant 0 : index
    %c384 = arith.constant 384 : index
    %36 = vector.load %arg8[%c0_22, %c384] : memref<2x512xf32, #tpu.memory_space<vmem>>, vector<1x128xf32>
    tpu.vector_store %arg8[%c0_22, %c384], %35 {strides = array<i32>} : memref<2x512xf32, #tpu.memory_space<vmem>>, vector<1x128xf32>,
    %cst_23 = arith.constant dense<0xFF800000> : vector<128xf32>
    %37 = vector.multi_reduction <maximumf>, %30, %cst_23 [0] : vector<192x128xf32> to vector<128xf32>
    %38 = vector.shape_cast %37 : vector<128xf32> to vector<1x128xf32>
    %39 = vector.broadcast %28 : f32 to vector<1x128xf32>
    %40 = arith.mulf %38, %39 : vector<1x128xf32>
    %c1_24 = arith.constant 1 : index
    %c384_25 = arith.constant 384 : index
    %41 = vector.load %arg8[%c1_24, %c384_25] : memref<2x512xf32, #tpu.memory_space<vmem>>, vector<1x128xf32>
    tpu.vector_store %arg8[%c1_24, %c384_25], %40 {strides = array<i32>} : memref<2x512xf32, #tpu.memory_space<vmem>>, vector<1x128xf32>,
    %c0_26 = arith.constant 0 : index
    %c0_27 = arith.constant 0 : index
    %42 = vector.load %arg5[%c0_26, %c0_27] : memref<2x256xf32, #tpu.memory_space<vmem>>, vector<1x256xf32>
    %c1_28 = arith.constant 1 : index
    %c0_29 = arith.constant 0 : index
    %43 = vector.load %arg5[%c1_28, %c0_29] : memref<2x256xf32, #tpu.memory_space<vmem>>, vector<1x256xf32>
    %c0_30 = arith.constant 0 : index
    %c111 = arith.constant 111 : index
    %44 = vector.load %arg8[%c0_30, %c111] : memref<2x512xf32, #tpu.memory_space<vmem>>, vector<2x256xf32>
    %45 = vector.broadcast %42 : vector<1x256xf32> to vector<2x256xf32>
    %46 = arith.mulf %44, %45 : vector<2x256xf32>
    %c0_31 = arith.constant 0 : index
    %c0_32 = arith.constant 0 : index
    %47 = vector.load %arg9[%c0_31, %c0_32] : memref<18x256xf32, #tpu.memory_space<vmem>>, vector<2x256xf32>
    tpu.vector_store %arg9[%c0_31, %c0_32], %46 {strides = array<i32>} : memref<18x256xf32, #tpu.memory_space<vmem>>, vector<2x256xf32>,
    %c0_33 = arith.constant 0 : index
    %c112 = arith.constant 112 : index
    %48 = vector.load %arg8[%c0_33, %c112] : memref<2x512xf32, #tpu.memory_space<vmem>>, vector<2x256xf32>
    %c2 = arith.constant 2 : index
    %c0_34 = arith.constant 0 : index
    %49 = vector.load %arg9[%c2, %c0_34] : memref<18x256xf32, #tpu.memory_space<vmem>>, vector<2x256xf32>
    tpu.vector_store %arg9[%c2, %c0_34], %48 {strides = array<i32>} : memref<18x256xf32, #tpu.memory_space<vmem>>, vector<2x256xf32>,
    %c0_35 = arith.constant 0 : index
    %c113 = arith.constant 113 : index
    %50 = vector.load %arg8[%c0_35, %c113] : memref<2x512xf32, #tpu.memory_space<vmem>>, vector<2x256xf32>
    %51 = vector.broadcast %43 : vector<1x256xf32> to vector<2x256xf32>
    %52 = arith.mulf %50, %51 : vector<2x256xf32>
    %c4 = arith.constant 4 : index
    %c0_36 = arith.constant 0 : index
    %53 = vector.load %arg9[%c4, %c0_36] : memref<18x256xf32, #tpu.memory_space<vmem>>, vector<2x256xf32>
    tpu.vector_store %arg9[%c4, %c0_36], %52 {strides = array<i32>} : memref<18x256xf32, #tpu.memory_space<vmem>>, vector<2x256xf32>,
    %c0_37 = arith.constant 0 : index
    %c127 = arith.constant 127 : index
    %54 = vector.load %arg8[%c0_37, %c127] : memref<2x512xf32, #tpu.memory_space<vmem>>, vector<2x256xf32>
    %55 = vector.broadcast %42 : vector<1x256xf32> to vector<2x256xf32>
    %56 = arith.mulf %54, %55 : vector<2x256xf32>
    %c6 = arith.constant 6 : index
    %c0_38 = arith.constant 0 : index
    %57 = vector.load %arg9[%c6, %c0_38] : memref<18x256xf32, #tpu.memory_space<vmem>>, vector<2x256xf32>
    tpu.vector_store %arg9[%c6, %c0_38], %56 {strides = array<i32>} : memref<18x256xf32, #tpu.memory_space<vmem>>, vector<2x256xf32>,
    %c0_39 = arith.constant 0 : index
    %c128_40 = arith.constant 128 : index
    %58 = vector.load %arg8[%c0_39, %c128_40] : memref<2x512xf32, #tpu.memory_space<vmem>>, vector<2x256xf32>
    %c8 = arith.constant 8 : index
    %c0_41 = arith.constant 0 : index
    %59 = vector.load %arg9[%c8, %c0_41] : memref<18x256xf32, #tpu.memory_space<vmem>>, vector<2x256xf32>
    tpu.vector_store %arg9[%c8, %c0_41], %58 {strides = array<i32>} : memref<18x256xf32, #tpu.memory_space<vmem>>, vector<2x256xf32>,
    %c0_42 = arith.constant 0 : index
    %c129 = arith.constant 129 : index
    %60 = vector.load %arg8[%c0_42, %c129] : memref<2x512xf32, #tpu.memory_space<vmem>>, vector<2x256xf32>
    %61 = vector.broadcast %43 : vector<1x256xf32> to vector<2x256xf32>
    %62 = arith.mulf %60, %61 : vector<2x256xf32>
    %c10 = arith.constant 10 : index
    %c0_43 = arith.constant 0 : index
    %63 = vector.load %arg9[%c10, %c0_43] : memref<18x256xf32, #tpu.memory_space<vmem>>, vector<2x256xf32>
    tpu.vector_store %arg9[%c10, %c0_43], %62 {strides = array<i32>} : memref<18x256xf32, #tpu.memory_space<vmem>>, vector<2x256xf32>,
    %c0_44 = arith.constant 0 : index
    %c143 = arith.constant 143 : index
    %64 = vector.load %arg8[%c0_44, %c143] : memref<2x512xf32, #tpu.memory_space<vmem>>, vector<2x256xf32>
    %65 = vector.broadcast %42 : vector<1x256xf32> to vector<2x256xf32>
    %66 = arith.mulf %64, %65 : vector<2x256xf32>
    %c12 = arith.constant 12 : index
    %c0_45 = arith.constant 0 : index
    %67 = vector.load %arg9[%c12, %c0_45] : memref<18x256xf32, #tpu.memory_space<vmem>>, vector<2x256xf32>
    tpu.vector_store %arg9[%c12, %c0_45], %66 {strides = array<i32>} : memref<18x256xf32, #tpu.memory_space<vmem>>, vector<2x256xf32>,
    %c0_46 = arith.constant 0 : index
    %c144 = arith.constant 144 : index
    %68 = vector.load %arg8[%c0_46, %c144] : memref<2x512xf32, #tpu.memory_space<vmem>>, vector<2x256xf32>
    %c14 = arith.constant 14 : index
    %c0_47 = arith.constant 0 : index
    %69 = vector.load %arg9[%c14, %c0_47] : memref<18x256xf32, #tpu.memory_space<vmem>>, vector<2x256xf32>
    tpu.vector_store %arg9[%c14, %c0_47], %68 {strides = array<i32>} : memref<18x256xf32, #tpu.memory_space<vmem>>, vector<2x256xf32>,
    %c0_48 = arith.constant 0 : index
    %c145 = arith.constant 145 : index
    %70 = vector.load %arg8[%c0_48, %c145] : memref<2x512xf32, #tpu.memory_space<vmem>>, vector<2x256xf32>
    %71 = vector.broadcast %43 : vector<1x256xf32> to vector<2x256xf32>
    %72 = arith.mulf %70, %71 : vector<2x256xf32>
    %c16 = arith.constant 16 : index
    %c0_49 = arith.constant 0 : index
    %73 = vector.load %arg9[%c16, %c0_49] : memref<18x256xf32, #tpu.memory_space<vmem>>, vector<2x256xf32>
    tpu.vector_store %arg9[%c16, %c0_49], %72 {strides = array<i32>} : memref<18x256xf32, #tpu.memory_space<vmem>>, vector<2x256xf32>,
    %c0_50 = arith.constant 0 : index
    %c0_51 = arith.constant 0 : index
    %74 = vector.load %arg6[%c0_50, %c0_51] : memref<192x18xf32, #tpu.memory_space<vmem>>, vector<64x18xf32>
    %c0_52 = arith.constant 0 : index
    %c0_53 = arith.constant 0 : index
    %75 = vector.load %arg9[%c0_52, %c0_53] : memref<18x256xf32, #tpu.memory_space<vmem>>, vector<18x256xf32>
    %cst_54 = arith.constant dense<0.000000e+00> : vector<64x256xf32>
    %76 = tpu.matmul %74, %75, %cst_54 {dimension_numbers = #tpu.dot_dimension_numbers<[1], [0], [0], [1], [0, 0, 1, 1], [], []>} : vector<64x18xf32>, vector<18x256xf32>, vector<64x256xf32> -> vector<64x256xf32>
    %c0_55 = arith.constant 0 : index
    %c0_56 = arith.constant 0 : index
    %c0_57 = arith.constant 0 : index
    %77 = vector.load %arg2[%c0_55, %c0_56, %c0_57] : memref<1x192x256xf32, #tpu.memory_space<vmem>>, vector<1x64x256xf32>
    %78 = vector.shape_cast %77 : vector<1x64x256xf32> to vector<64x256xf32>
    %79 = arith.negf %76 : vector<64x256xf32>
    %80 = math.exp %79 : vector<64x256xf32>
    %cst_58 = arith.constant 1.000000e+00 : f32
    %81 = vector.broadcast %cst_58 : f32 to vector<64x256xf32>
    %82 = arith.addf %81, %80 : vector<64x256xf32>
    %83 = arith.divf %81, %82 : vector<64x256xf32>
    %84 = arith.mulf %78, %83 : vector<64x256xf32>
    %85 = arith.addf %84, %78 : vector<64x256xf32>
    %c0_59 = arith.constant 0 : index
    %c0_60 = arith.constant 0 : index
    %c0_61 = arith.constant 0 : index
    %86 = vector.load %arg7[%c0_59, %c0_60, %c0_61] : memref<1x192x256xf32, #tpu.memory_space<vmem>>, vector<1x64x256xf32>
    %87 = vector.shape_cast %86 : vector<1x64x256xf32> to vector<64x256xf32>
    %88 = vector.shape_cast %85 : vector<64x256xf32> to vector<1x64x256xf32>
    tpu.vector_store %arg7[%c0_59, %c0_60, %c0_61], %88 {strides = array<i32>} : memref<1x192x256xf32, #tpu.memory_space<vmem>>, vector<1x64x256xf32>,
    %c64 = arith.constant 64 : index
    %c0_62 = arith.constant 0 : index
    %89 = vector.load %arg6[%c64, %c0_62] : memref<192x18xf32, #tpu.memory_space<vmem>>, vector<64x18xf32>
    %c0_63 = arith.constant 0 : index
    %c0_64 = arith.constant 0 : index
    %90 = vector.load %arg9[%c0_63, %c0_64] : memref<18x256xf32, #tpu.memory_space<vmem>>, vector<18x256xf32>
    %cst_65 = arith.constant dense<0.000000e+00> : vector<64x256xf32>
    %91 = tpu.matmul %89, %90, %cst_65 {dimension_numbers = #tpu.dot_dimension_numbers<[1], [0], [0], [1], [0, 0, 1, 1], [], []>} : vector<64x18xf32>, vector<18x256xf32>, vector<64x256xf32> -> vector<64x256xf32>
    %c0_66 = arith.constant 0 : index
    %c64_67 = arith.constant 64 : index
    %c0_68 = arith.constant 0 : index
    %92 = vector.load %arg2[%c0_66, %c64_67, %c0_68] : memref<1x192x256xf32, #tpu.memory_space<vmem>>, vector<1x64x256xf32>
    %93 = vector.shape_cast %92 : vector<1x64x256xf32> to vector<64x256xf32>
    %94 = arith.negf %91 : vector<64x256xf32>
    %95 = math.exp %94 : vector<64x256xf32>
    %cst_69 = arith.constant 1.000000e+00 : f32
    %96 = vector.broadcast %cst_69 : f32 to vector<64x256xf32>
    %97 = arith.addf %96, %95 : vector<64x256xf32>
    %98 = arith.divf %96, %97 : vector<64x256xf32>
    %99 = arith.mulf %93, %98 : vector<64x256xf32>
    %100 = arith.addf %99, %93 : vector<64x256xf32>
    %c0_70 = arith.constant 0 : index
    %c64_71 = arith.constant 64 : index
    %c0_72 = arith.constant 0 : index
    %101 = vector.load %arg7[%c0_70, %c64_71, %c0_72] : memref<1x192x256xf32, #tpu.memory_space<vmem>>, vector<1x64x256xf32>
    %102 = vector.shape_cast %101 : vector<1x64x256xf32> to vector<64x256xf32>
    %103 = vector.shape_cast %100 : vector<64x256xf32> to vector<1x64x256xf32>
    tpu.vector_store %arg7[%c0_70, %c64_71, %c0_72], %103 {strides = array<i32>} : memref<1x192x256xf32, #tpu.memory_space<vmem>>, vector<1x64x256xf32>,
    %c128_73 = arith.constant 128 : index
    %c0_74 = arith.constant 0 : index
    %104 = vector.load %arg6[%c128_73, %c0_74] : memref<192x18xf32, #tpu.memory_space<vmem>>, vector<64x18xf32>
    %c0_75 = arith.constant 0 : index
    %c0_76 = arith.constant 0 : index
    %105 = vector.load %arg9[%c0_75, %c0_76] : memref<18x256xf32, #tpu.memory_space<vmem>>, vector<18x256xf32>
    %cst_77 = arith.constant dense<0.000000e+00> : vector<64x256xf32>
    %106 = tpu.matmul %104, %105, %cst_77 {dimension_numbers = #tpu.dot_dimension_numbers<[1], [0], [0], [1], [0, 0, 1, 1], [], []>} : vector<64x18xf32>, vector<18x256xf32>, vector<64x256xf32> -> vector<64x256xf32>
    %c0_78 = arith.constant 0 : index
    %c128_79 = arith.constant 128 : index
    %c0_80 = arith.constant 0 : index
    %107 = vector.load %arg2[%c0_78, %c128_79, %c0_80] : memref<1x192x256xf32, #tpu.memory_space<vmem>>, vector<1x64x256xf32>
    %108 = vector.shape_cast %107 : vector<1x64x256xf32> to vector<64x256xf32>
    %109 = arith.negf %106 : vector<64x256xf32>
    %110 = math.exp %109 : vector<64x256xf32>
    %cst_81 = arith.constant 1.000000e+00 : f32
    %111 = vector.broadcast %cst_81 : f32 to vector<64x256xf32>
    %112 = arith.addf %111, %110 : vector<64x256xf32>
    %113 = arith.divf %111, %112 : vector<64x256xf32>
    %114 = arith.mulf %108, %113 : vector<64x256xf32>
    %115 = arith.addf %114, %108 : vector<64x256xf32>
    %c0_82 = arith.constant 0 : index
    %c128_83 = arith.constant 128 : index
    %c0_84 = arith.constant 0 : index
    %116 = vector.load %arg7[%c0_82, %c128_83, %c0_84] : memref<1x192x256xf32, #tpu.memory_space<vmem>>, vector<1x64x256xf32>
    %117 = vector.shape_cast %116 : vector<1x64x256xf32> to vector<64x256xf32>
    %118 = vector.shape_cast %115 : vector<64x256xf32> to vector<1x64x256xf32>
    tpu.vector_store %arg7[%c0_82, %c128_83, %c0_84], %118 {strides = array<i32>} : memref<1x192x256xf32, #tpu.memory_space<vmem>>, vector<1x64x256xf32>,
    return
  }
  func.func @transform_0(%arg0: i32, %arg1: i32) -> (i32, i32, i32) {
    %c0_i32 = arith.constant 0 : i32
    %c0_i32_0 = arith.constant 0 : i32
    return %arg0, %c0_i32, %arg1 : i32, i32, i32
  }
  func.func @transform_1(%arg0: i32, %arg1: i32) -> (i32, i32, i32) {
    %c2_i32 = arith.constant 2 : i32
    %0 = arith.muli %arg1, %c2_i32 : i32
    %c1_i32 = arith.constant 1 : i32
    %1 = arith.subi %0, %c1_i32 : i32
    %c0_i32 = arith.constant 0 : i32
    %2 = arith.maxsi %1, %c0_i32 : i32
    %c0_i32_0 = arith.constant 0 : i32
    %c0_i32_1 = arith.constant 0 : i32
    return %arg0, %c0_i32_0, %2 : i32, i32, i32
  }
  func.func @transform_2(%arg0: i32, %arg1: i32) -> (i32, i32, i32) {
    %c1_i32 = arith.constant 1 : i32
    %0 = arith.addi %arg1, %c1_i32 : i32
    %c2_i32 = arith.constant 2 : i32
    %1 = arith.muli %0, %c2_i32 : i32
    %c1_i32_0 = arith.constant 1 : i32
    %2 = arith.minsi %1, %c1_i32_0 : i32
    %c0_i32 = arith.constant 0 : i32
    %c0_i32_1 = arith.constant 0 : i32
    return %arg0, %c0_i32, %2 : i32, i32, i32
  }
  func.func @transform_3(%arg0: i32, %arg1: i32) -> (i32, i32) {
    %c0_i32 = arith.constant 0 : i32
    %c0_i32_0 = arith.constant 0 : i32
    return %c0_i32, %arg1 : i32, i32
  }
  func.func @transform_4(%arg0: i32, %arg1: i32) -> (i32, i32) {
    %c0_i32 = arith.constant 0 : i32
    %c0_i32_0 = arith.constant 0 : i32
    %c0_i32_1 = arith.constant 0 : i32
    return %c0_i32, %c0_i32_0 : i32, i32
  }
  func.func @transform_5(%arg0: i32, %arg1: i32) -> (i32, i32, i32) {
    %c0_i32 = arith.constant 0 : i32
    %c0_i32_0 = arith.constant 0 : i32
    return %arg0, %c0_i32, %arg1 : i32, i32, i32
  }
}

</mosaic_0001>

<bundles_post_ra>
// kernel: tpu_custom_call.1
= control target key start
LH: loop header
LB: loop body
LE: loop exit
PB: predicated region body
PF: predicated region fallthrough
CT: control target
= control target key end

     0   :  { %s3851_s0 = inlined_call_operand.hbm [shape: f32[2,192,256], index: 0, kind: input, shape index: {}]   ;;  %s3852_s1 = inlined_call_operand.hbm [shape: f32[2,192,256], index: 1, kind: input, shape index: {}]   ;;  %s3853_s2 = inlined_call_operand.hbm [shape: f32[2,192,256], index: 2, kind: input, shape index: {}]   ;;  %s3854_s3 = inlined_call_operand.vmem [shape: f32[2,256], index: 3, kind: input, shape index: {}]   ;;  %s3855_s4 = inlined_call_operand.vmem [shape: f32[192,18], index: 4, kind: input, shape index: {}]   ;;  %s3856_s5 = inlined_call_operand.hbm [shape: f32[2,192,256], index: 5, kind: output, shape index: {}]  }
   0x1   :  { %3870 = sst [smem:[#allocation19_spill]] %s3852_s1 }
   0x2   :  { %10 = vsyncpa [#allocation5], 0 }
   0x3   :  { %12 = vsyncpa [#allocation5 + $0x1], 0 }
   0x4   :  { %13 = vsyncpa [#allocation8], 0 }
   0x5   :  { %15 = vsyncpa [#allocation8 + $0x1], 0 }
   0x6   :  { %16 = vsyncpa [#allocation6], 0 }
   0x7   :  { %18 = vsyncpa [#allocation6 + $0x1], 0  ;;  %s2885_s18 = smov 0   ;;  %s2887_s19 = smov 0  }
   0x8   :  { %s2889_s20 = smov 0   ;;  %s2891_s21 = smov 0  }
   0x9   :  { %s2893_s22 = smov 0   ;;  %s2895_s23 = smov 0  }
   0xa LB: > { %3871 = sst [smem:[#allocation14_spill]] %s2821_s20  ;;  %s2916_s24 = sadd.s32 4294967295, %s2833_s23   ;;  %s2833_s23 = sphi %s2895_s23, %s24_s23   ;;  %s2829_s22 = sphi %s2893_s22, %s3899_s22   ;;  %s2825_s21 = sphi %s2891_s21, %s3898_s21   ;;  %s2821_s20 = sphi %s2889_s20, %s3897_s20   ;;  %s2817_s19 = sphi %s2887_s19, %s3901_s19   ;;  %s2813_s18 = sphi %s2885_s18, %s3900_s18  }
   0xb   : > { %3872 = sst [smem:[#allocation15_spill]] %s2829_s22  ;;  %s2256_s25 = sadd.s32 4294967294, %s2833_s23  }
   0xc   : > { %3873 = sst [smem:[#allocation16_spill]] %s2833_s23  ;;  %s36_s26 = sadd.s32 1, %s2829_s22 }
   0xd   : > { %s45_s27 = sadd.s32 1, %s2821_s20  ;;  %p38_p0 = scmp.ge.s32.totalorder %s36_s26, 2 }
   0xe   : > { %p52_p1 = scmp.ne.s32.totalorder %s2821_s20, %s2817_s19  ;;  %p53_p2 = scmp.eq.s32.totalorder %s2833_s23, 0 }
   0xf   : > { %p58_p3 = scmp.ne.s32.totalorder %s2817_s19, %s2813_s18  ;;  %s3903_s26 = smov (%p38_p0, %s36_s26), 0 }
  0x10   : > { %3874 = sst [smem:[#allocation17_spill]] %s3903_s26  ;;  %p2928_p4 = por %p53_p2, %p52_p1 }
  0x11   : > { %p59_p5 = scmp.eq.s32.totalorder %s2916_s24, 0  ;;  %s40_s29 = ssub.s32 %s2829_s22, %s3903_s26 }
  0x12   : > { %p203_p6 = scmp.eq.s32.totalorder %s2916_s24, 1  ;;  %p43_p7 = scmp.eq.s32.totalorder %s40_s29, 0 }
  0x13   : > { %p2936_p8 = por %p59_p5, %p58_p3  ;;  %p209_p10 = scmp.eq.s32.totalorder %s2256_s25, 1 }
  0x14   : > { %p2940_p9 = por %p203_p6, %p52_p1  ;;  %p2396_p13 = scmp.lt.s32.totalorder %s2833_s23, 2 }
  0x15   : > { %s3876_s30 = scalar_select %p2936_p8, 1, 0 }
  0x16   : > { %s3877_s6 = scalar_select %p2940_p9, 1, 0 }
  0x17   : > { %s2945_s7 = scalar_select %p43_p7, %s2821_s20, %s45_s27  }
  0x18   : > { %p2947_p11 = por %p209_p10, %p58_p3  ;;  %s2954_s9 = sand.u32 1, %s2821_s20  }
  0x19   : > { %3878 = sst [smem:[#allocation18_spill]] %s2945_s7  ;;  %s2957_s10 = smul.u32 6144, %s2829_s22 }
  0x1a   : > { %s3879_s8 = scalar_select %p2947_p11, 1, 0 }
  0x1b   : > { %p2961_p0 = pnand %p2396_p13, %p2928_p4  ;;  %s264_s12 = sand.u32 1, %s2833_s23  }
  0x1c   : > { %s3857_s13 = smul.u32 192, %s2954_s9  ;;  %s3881_s1 = sld [smem:[#allocation19_spill]] }
  0x1d   : > { %s2977_s27 = scalar_lea.sflag [#allocation8], %s264_s12  ;;  %p2983_p2 = pneg %p2961_p0 }
  0x1e   : > { %s268_s17 = scalar_lea.vmem [#allocation7], %s3857_s13 }
  0x1f   : > { %s280_s25 = sshll.u32 %s268_s17, 4  ;;  %s2975_s25 = int_to_ptr.vmem [resolvable:$true] %s280_s25 }
  0x22   : > { %s2971_s16 = scalar_lea.hbm %s3881_s1, %s2957_s10  ;;  %s2662_s13 = scalar_lea.hbm %s3881_s1, 12288 }
  0x23   : > { %s2657_s28 = scalar_lea.hbm %s2971_s16, 3072  ;;  %p2663_p5 = scmp.lt.u32.totalorder %s2971_s16, %s3881_s1 }
  0x24   : > { %p2658_p1 = scmp.ne.s32.totalorder %s2971_s16, %s2657_s28  ;;  %p2664_p6 = scmp.lt.u32.totalorder %s2662_s13, %s2657_s28 }
  0x25   : > { %p2666_p10 = scmp.lt.u32.totalorder %s2657_s28, %s2971_s16 }
  0x26   : > { %p2660_p3 = pnand %p2983_p2, %p2658_p1  ;;  %p2665_p7 = por %p2664_p6, %p2663_p5 }
  0x28   : > { %p2661_p4 = pneg %p2660_p3  ;;  %p2667_p13 = por %p2666_p10, %p2665_p7 }
  0x2a   : > { %p2668_p12 = pnand %p2667_p13, %p2661_p4 }
  0x2c   : > { %2671 = shalt.err (!%p2668_p12)
}
  0x2d   : > { %s2672_s12 = scalar_lea.vmem %s2975_s25, 3072  ;;  %s2835_s14 = smov [#allocation7]  }
  0x2e   : > { %p2673_p1 = scmp.ne.s32.totalorder %s2975_s25, %s2672_s12  ;;  %s2677_s15 = sshll.u32 %s2835_s14, 4  ;;  %s2678_s15 = int_to_ptr.vmem [resolvable:$false] %s2677_s15 }
  0x2f   : > { %s2679_s26 = scalar_lea.vmem %s2678_s15, 6144  ;;  %p2680_p9 = scmp.lt.s32.totalorder %s2975_s25, %s2678_s15 }
  0x30   : > { %p2675_p3 = pnand %p2673_p1, %p2983_p2  ;;  %p2681_p8 = scmp.lt.s32.totalorder %s2679_s26, %s2672_s12 }
  0x32   : > { %p2676_p11 = pneg %p2675_p3  ;;  %p2682_p5 = por %p2681_p8, %p2680_p9 }
  0x34   : > { %p2683_p6 = pnand %p2682_p5, %p2676_p11 }
  0x36   : > { %2686 = shalt.err (!%p2683_p6)
}
  0x37   : > { %s3864_s13 = smov 256   ;;  %s3862_s28 = smov 128  }
  0x38   : > { %s3863_s17 = smov 8   ;;  %p2263_p8 = scmp.ge.s32.totalorder %s2833_s23, 1 }
  0x39   : > { %2388 = dma.hbm_to_vmem [thread:$0]  (!%p2961_p0), %s2971_s16, 3072, %s2975_s25, %s2977_s27, %s3864_s13, %s3862_s28, %s3863_s17  }
  0x3a   : > { %p314_p9 = scmp.lt.s32.totalorder %s2833_s23, 3  ;;  %s2365_s14 = smul.u32 384, %s2954_s9 }
  0x3b   : > { %s3021_s1 = scalar_lea.hbm %s3851_s0, %s2957_s10  ;;  %s2348_s22 = sadd.s32 128, %s2957_s10 }
  0x3c   : > { %p3012_p11 = pnand %p2263_p8, %p314_p9  ;;  %s245_s7 = scalar_lea.vmem [#allocation4], %s2365_s14 }
  0x3d   : > { %s254_s16 = sshll.u32 %s245_s7, 4  ;;  %s3027_s17 = scalar_lea.hbm %s3853_s2, %s2348_s22  ;;  %s3029_s16 = int_to_ptr.vmem [resolvable:$true] %s254_s16 }
  0x3e   : > { %s3883_s12 = scalar_select %p3012_p11, 1, 0 }
  0x3f   : > { %s3884_s13 = smul.u32 192, %s2954_s9  ;;  %s242_s26 = scalar_lea.sflag [#allocation5], %s2954_s9 }
  0x40   : > { %s2687_s23 = scalar_lea.hbm %s3021_s1, 6144  ;;  %s2692_s14 = scalar_lea.hbm %s3851_s0, 12288 }
  0x41   : > { %s3033_s20 = scalar_lea.vmem [#allocation9], %s3884_s13  ;;  %p2688_p12 = scmp.ne.s32.totalorder %s3021_s1, %s2687_s23 }
  0x42   : > { %s306_s15 = sshll.u32 %s3033_s20, 4  ;;  %p2693_p10 = scmp.lt.u32.totalorder %s3021_s1, %s3851_s0  ;;  %s3064_s15 = int_to_ptr.vmem [resolvable:$true] %s306_s15 }
  0x43   : > { %p2690_p4 = pnand %p2688_p12, %p2983_p2  ;;  %p2694_p13 = scmp.lt.u32.totalorder %s2692_s14, %s2687_s23 }
  0x44   : > { %p2696_p3 = scmp.lt.u32.totalorder %s2687_s23, %s3021_s1 }
  0x45   : > { %p2691_p7 = pneg %p2690_p4  ;;  %p2695_p1 = por %p2694_p13, %p2693_p10 }
  0x47   : > { %p2697_p5 = por %p2696_p3, %p2695_p1 }
  0x49   : > { %p2698_p6 = pnand %p2697_p5, %p2691_p7 }
  0x4b   : > { %2701 = shalt.err (!%p2698_p6)
}
  0x4c   : > { %s2702_s13 = scalar_lea.vmem %s3029_s16, 6144  ;;  %s2839_s25 = smov [#allocation4]  }
  0x4d   : > { %p2703_p8 = scmp.ne.s32.totalorder %s3029_s16, %s2702_s13  ;;  %s2707_s10 = sshll.u32 %s2839_s25, 4  ;;  %s2708_s10 = int_to_ptr.vmem [resolvable:$false] %s2707_s10 }
  0x4e   : > { %s2709_s7 = scalar_lea.vmem %s2708_s10, 12288  ;;  %p2710_p4 = scmp.lt.s32.totalorder %s3029_s16, %s2708_s10 }
  0x4f   : > { %p2705_p9 = pnand %p2703_p8, %p2983_p2  ;;  %p2711_p11 = scmp.lt.s32.totalorder %s2709_s7, %s2702_s13 }
  0x51   : > { %p2706_p12 = pneg %p2705_p9  ;;  %p2712_p10 = por %p2711_p11, %p2710_p4 }
  0x53   : > { %p2713_p13 = pnand %p2712_p10, %p2706_p12 }
  0x55   : > { %2716 = shalt.err (!%p2713_p13)
}
  0x56   : > { %s2840_s23 = smov 16   ;;  %s3885_s14 = smov 256  }
  0x57   : > { %2385 = dma.hbm_to_vmem [thread:$0]  (!%p2961_p0), %s3021_s1, 6144, %s3029_s16, %s242_s26, %s3885_s14, %s3885_s14, %s2840_s23  }
  0x58   : > { %s2717_s28 = scalar_lea.hbm %s3027_s17, 3072  ;;  %s2722_s9 = scalar_lea.hbm %s3853_s2, 12288 }
  0x59   : > { %p2718_p11 = scmp.ne.s32.totalorder %s3027_s17, %s2717_s28  ;;  %p2723_p3 = scmp.lt.u32.totalorder %s3027_s17, %s3853_s2 }
  0x5a   : > { %p2724_p5 = scmp.lt.u32.totalorder %s2722_s9, %s2717_s28  ;;  %p2726_p8 = scmp.lt.u32.totalorder %s2717_s28, %s3027_s17 }
  0x5b   : > { %p2720_p7 = pnand %p2718_p11, %p2983_p2 }
  0x5c   : > { %p2725_p6 = por %p2724_p5, %p2723_p3 }
  0x5d   : > { %p2721_p1 = pneg %p2720_p7 }
  0x5e   : > { %p2727_p9 = por %p2726_p8, %p2725_p6 }
  0x60   : > { %p2728_p12 = pnand %p2727_p9, %p2721_p1 }
  0x62   : > { %2731 = shalt.err (!%p2728_p12)
}
  0x63   : > { %s2732_s1 = scalar_lea.vmem %s3064_s15, 3072  ;;  %s2841_s20 = smov [#allocation9]  }
  0x64   : > { %p2733_p4 = scmp.ne.s32.totalorder %s3064_s15, %s2732_s1  ;;  %s2737_s16 = sshll.u32 %s2841_s20, 4  ;;  %s2738_s16 = int_to_ptr.vmem [resolvable:$false] %s2737_s16 }
  0x65   : > { %s2739_s26 = scalar_lea.vmem %s2738_s16, 6144  ;;  %p2740_p11 = scmp.lt.s32.totalorder %s3064_s15, %s2738_s16 }
  0x66   : > { %p2735_p10 = pnand %p2733_p4, %p2983_p2  ;;  %p2741_p7 = scmp.lt.s32.totalorder %s2739_s26, %s2732_s1 }
  0x68   : > { %p2736_p13 = pneg %p2735_p10  ;;  %p2742_p3 = por %p2741_p7, %p2740_p11 }
  0x6a   : > { %p2743_p5 = pnand %p2742_p3, %p2736_p13 }
  0x6c   : > { %2746 = shalt.err (!%p2743_p5)
}
  0x6d   : > { %s3886_s7 = smov 8   ;;  %s3887_s23 = smov 128  }
  0x6e   : > { %2391 = dma.hbm_to_vmem [thread:$0]  (!%p2961_p0), %s3027_s17, 3072, %s3064_s15, %s2977_s27, %s3885_s14, %s3887_s23, %s3886_s7  }
  0x6f   : > { %p3888_p2 = scmp.ne.s32.totalorder %s3883_s12, 0 }
  0x70   : > { %s3094_s29 = sand.u32 (!%p3888_p2), 1, %s2817_s19   ;;  %p3889_p1 = scmp.ne.s32.totalorder (!%p3888_p2), %s3876_s30, 0 }
  0x71   : > { %318 = sbr.rel (%p3888_p2) target bundleno = 769 (0x301), region = 40  ;;  %s321_s22 = scalar_lea.sflag (!%p3888_p2), [#allocation5], %s3094_s29 }
  0x72   : > { %s2371_s28 = smul.u32 (!%p3888_p2), 384, %s3094_s29 }
  0x74   : > { %s3100_s11 = scalar_lea.vmem (!%p3888_p2), [#allocation4], %s2371_s28 }
  0x78   : > { %2800 = dma.done.wait (%p3889_p1), %s321_s22, 6144  }
  0x79   : > { %2802 = vsyncadd (%p3889_p1), %s321_s22, 4294961152  ;;  %s329_s27 = sand.u32 1, %s2916_s24   ;;  %s2372_s17 = smul.u32 192, %s3094_s29 }
  0x7a   : > { %s330_s12 = scalar_lea.sflag [#allocation8], %s329_s27 }
  0x7b   : > { %s3110_s15 = scalar_lea.vmem [#allocation7], %s2372_s17 }
  0x7c   : > { %2804 = dma.done.wait (%p3889_p1), %s330_s12, 6144  }
  0x7d   : > { %2806 = vsyncadd (%p3889_p1), %s330_s12, 4294961152  ;;  %v3869_v0 = vlaneseq  ;;  %v2842_v1 = vmov 1983009808   ;;  %v2264_v7 = vld [vmem:[%s3854_s3 + $0x1] ss:$2 sm:$0x3] }
  0x7e   : > { %v813_v2 = vunpack.c.l.s4 %v2842_v1  ;;  %v3125_v8 = vld [vmem:[%s3100_s11] sm:$0xff]  ;;  %v3128_v9 = vld [vmem:[%s3100_s11 + $0x8] sm:$0xff]  ;;  %v3138_v13 = vld [vmem:[%s3100_s11 + $0x10] sm:$0xff]  ;;  %v2843_v38 = vmov 1966171168   ;;  %s2844_s14 = smov 113  }
  0x7f   : > { %v3117_v3 = vshrl.u32 %v3869_v0, 7  ;;  %v3141_v14 = vld [vmem:[%s3100_s11 + $0x18] sm:$0xff]  ;;  %v3144_v15 = vld [vmem:[%s3100_s11 + $0x20] sm:$0xff]  ;;  %v3147_v16 = vld [vmem:[%s3100_s11 + $0x28] sm:$0xff]  ;;  %v448_v19 = vadd.f32 %v3138_v13, %v3125_v8  ;;  %v512_v39 = vunpack.c.l.s4 %v2843_v38  ;;  %s2845_s13 = smov 1   ;;  %s2846_s10 = smov 15  }
  0x80   : > { %v814_v6 = vunpack.c.0.s8 %v813_v2  ;;  %v3150_v17 = vld [vmem:[%s3100_s11 + $0x30] sm:$0xff]  ;;  %v3153_v18 = vld [vmem:[%s3100_s11 + $0x38] sm:$0xff]  ;;  %v477_v20 = vadd.f32 %v3141_v14, %v3128_v9  ;;  %v408_v22 = vld [vmem:[%s3100_s11 + $0x40] sm:$0xff]  ;;  %s2847_s1 = smov 111   ;;  %s2848_s20 = smov 127   ;;  %vm908_vm1 = vcmask 924672  }
  0x81   : > { %v805_v4 = vsub.s32 0, %v3117_v3  ;;  %v809_v5 = vsub.s32 1, %v3117_v3  ;;  %v409_v23 = vld [vmem:[%s3100_s11 + $0x48] sm:$0xff]  ;;  %v410_v24 = vld [vmem:[%s3100_s11 + $0x50] sm:$0xff]  ;;  %v411_v26 = vld [vmem:[%s3100_s11 + $0x58] sm:$0xff]  ;;  %v449_v29 = vadd.f32 %v448_v19, %v3144_v15  ;;  %v513_v52 = vunpack.c.0.s8 %v512_v39  ;;  %s2849_s16 = smov 17  }
  0x82   : > { %v3131_v10 = vsub.s32 %v814_v6, %v3117_v3  ;;  %v534_v25 = vmax.f32 %v410_v24, %v408_v22  ;;  %v412_v27 = vld [vmem:[%s3100_s11 + $0x60] sm:$0xff]  ;;  %v413_v28 = vld [vmem:[%s3100_s11 + $0x68] sm:$0xff]  ;;  %v478_v30 = vadd.f32 %v477_v20, %v3147_v16  ;;  %v563_v32 = vmax.f32 %v411_v26, %v409_v23  ;;  %v414_v33 = vld [vmem:[%s3100_s11 + $0x70] sm:$0xff]  ;;  %s3333_s26 = scalar_lea.vmem [#allocation9], %s2372_s17  ;;  %s2850_s7 = smov 16  }
  0x83   : > { %v892_v11 = vrot.slane %v2264_v7, %v805_v4  ;;  %v896_v12 = vrot.slane %v2264_v7, %v809_v5  ;;  %v415_v35 = vld [vmem:[%s3100_s11 + $0x78] sm:$0xff]  ;;  %v450_v36 = vadd.f32 %v449_v29, %v3150_v17  ;;  %v416_v41 = vld [vmem:[%s3100_s11 + $0x80] sm:$0xff]  ;;  %v417_v43 = vld [vmem:[%s3100_s11 + $0x88] sm:$0xff]  ;;  %v3187_v2 = vsub.s32 %v513_v52, %v3117_v3  ;;  %s2851_s23 = smov 112   ;;  %s2091_s22 = scalar_lea.sflag [#allocation6], %s3094_s29 }
  0x84   : > { %v535_v34 = vmax.f32 %v412_v27, %v534_v25  ;;  %v479_v37 = vadd.f32 %v478_v30, %v3153_v18  ;;  %v564_v40 = vmax.f32 %v413_v28, %v563_v32  ;;  %v418_v47 = vld [vmem:[%s3100_s11 + $0x90] sm:$0xff]  ;;  %v419_v49 = vld [vmem:[%s3100_s11 + $0x98] sm:$0xff]  ;;  %v420_v54 = vld [vmem:[%s3100_s11 + $0xa0] sm:$0xff]  ;;  %vm975_vm2 = vcmask 7168   ;;  %p3892_p6 = scmp.ne.s32.totalorder %s3877_s6, 0  ;;  %s2853_s17 = smov [#allocation10]  }
  0x85   : > { %v897_v21 = vcombine.low %v892_v11, %v896_v12  ;;  %v451_v44 = vadd.f32 %v450_v36, %v408_v22  ;;  %v421_v56 = vld [vmem:[%s3100_s11 + $0xa8] sm:$0xff]  ;;  %v422_v60 = vld [vmem:[%s3100_s11 + $0xb0] sm:$0xff]  ;;  %v423_v62 = vld [vmem:[%s3100_s11 + $0xb8] sm:$0xff]  ;;  %v532_v11 = vmax.f32 %v3125_v8, %v3144_v15  ;;  %v533_v12 = vmax.f32 %v3138_v13, %v3150_v17  ;;  %s2751_s12 = sshll.u32 %s2853_s17, 4  ;;  %s2752_s12 = int_to_ptr.vmem [resolvable:$false] %s2751_s12 }
  0x86   : > { %v536_v42 = vmax.f32 %v414_v33, %v535_v34  ;;  %v480_v45 = vadd.f32 %v479_v37, %v409_v23  ;;  %v565_v46 = vmax.f32 %v415_v35, %v564_v40  ;;  %v424_v7 = vld [vmem:[%s3100_s11 + $0xc0] sm:$0xff]  ;;  %v425_v20 = vld [vmem:[%s3100_s11 + $0xc8] sm:$0xff]  ;;  %v561_v23 = vmax.f32 %v3128_v9, %v3147_v16  ;;  %v3223_v52 = vld [vmem:[%s3100_s11 + $0xf0] sm:$0xff] }
  0x87   : > { %v3168_v31 = vrot.slane %v897_v21, %v3131_v10  ;;  %v452_v50 = vadd.f32 %v451_v44, %v410_v24  ;;  %v798_v24 = vld [vmem:[%s3854_s3] ss:$2 sm:$0x3]  ;;  %v613_v25 = vld [vmem:[%s3110_s15] sm:$0xff]  ;;  %vm936_vm3 = vcmask 121856   ;;  %vm822_vm4 = vcmask 908288  }
  0x88   : > { %v537_v48 = vmax.f32 %v416_v41, %v536_v42  ;;  %v481_v51 = vadd.f32 %v480_v45, %v411_v26  ;;  %v566_v53 = vmax.f32 %v417_v43, %v565_v46  ;;  %v806_v29 = vrot.slane %v798_v24, %v805_v4  ;;  %v614_v32 = vld [vmem:[%s3110_s15 + $0x8] sm:$0xff]  ;;  %v617_v38 = vld [vmem:[%s3110_s15 + $0x20] sm:$0xff] }
  0x89   : > { %905 = vrot.lane.b32.xlu0 %v3168_v31, %s2844_s14  ;;  %v453_v57 = vadd.f32 %v452_v50, %v412_v27  ;;  %v426_v27 = vld [vmem:[%s3100_s11 + $0xd0] sm:$0xff]  ;;  %v810_v30 = vrot.slane %v798_v24, %v809_v5  ;;  %v618_v39 = vld [vmem:[%s3110_s15 + $0x28] sm:$0xff]  ;;  %v637_v40 = vadd.f32 %v614_v32, %v613_v25  ;;  %v3214_v42 = vld [vmem:[%s3100_s11 + $0xe0] sm:$0xff]  ;;  %v672_v3 = vmax.f32 %v613_v25, %v617_v38 }
  0x8a   : > { %v538_v55 = vmax.f32 %v418_v47, %v537_v48  ;;  %v482_v58 = vadd.f32 %v481_v51, %v413_v28  ;;  %v567_v59 = vmax.f32 %v419_v49, %v566_v53  ;;  %v673_v5 = vmax.f32 %v614_v32, %v618_v39  ;;  %v429_v45 = vld [vmem:[%s3100_s11 + $0xe8] sm:$0xff]  ;;  %v619_v48 = vld [vmem:[%s3110_s15 + $0x30] sm:$0xff]  ;;  %v714_v28 = vld [vmem:[%s3333_s26 + $0x38] sm:$0xff] }
  0x8b   : > { %v454_v63 = vadd.f32 %v453_v57, %v414_v33  ;;  %v615_v33 = vld [vmem:[%s3110_s15 + $0x10] sm:$0xff]  ;;  %v811_v4 = vcombine.low %v806_v29, %v810_v30  ;;  %v3250_v29 = vld [vmem:[%s3110_s15 + $0x58] sm:$0xff]  ;;  %v3253_v30 = vld [vmem:[%s3110_s15 + $0x60] sm:$0xff]  ;;  %vm947_vm5 = vcmask 1039360   ;;  %vm849_vm6 = vcmask 138240  }
  0x8c   : > { %v539_v61 = vmax.f32 %v420_v54, %v538_v55  ;;  %v483_v1 = vadd.f32 %v482_v58, %v415_v35  ;;  %v568_v6 = vmax.f32 %v421_v56, %v567_v59  ;;  %v427_v35 = vld [vmem:[%s3100_s11 + $0xd8] sm:$0xff]  ;;  %v638_v50 = vadd.f32 %v637_v40, %v615_v33  ;;  %v716_v15 = vld [vmem:[%s3333_s26 + $0x48] sm:$0xff] }
  0x8d   : > { %997 = vrot.lane.b32.xlu0 %v3168_v31, %s2845_s13  ;;  %v455_v21 = vadd.f32 %v454_v63, %v416_v41  ;;  %v818_v53 = vrot.slane %v811_v4, %v3131_v10  ;;  %v674_v55 = vmax.f32 %v615_v33, %v619_v48  ;;  %v431_v59 = vld [vmem:[%s3100_s11 + $0xf8] sm:$0xff]  ;;  %v3233_v63 = vld [vmem:[%s3110_s15 + $0x48] sm:$0xff]  ;;  %vm1094_vm7 = vcmask 916480  }
  0x8e   : > { %v540_v19 = vmax.f32 %v422_v60, %v539_v61  ;;  %v484_v22 = vadd.f32 %v483_v1, %v417_v43  ;;  %v569_v26 = vmax.f32 %v423_v62, %v568_v6  ;;  %v616_v43 = vld [vmem:[%s3110_s15 + $0x18] sm:$0xff]  ;;  %vm880_vm8 = vcmask 130048  }
  0x8f   : > { %v456_v36 = vadd.f32 %v455_v21, %v418_v47  ;;  %v639_v1 = vadd.f32 %v638_v50, %v616_v43  ;;  %v3239_v21 = vld [vmem:[%s3100_s11 + $0x108] sm:$0xff]  ;;  %1033 = vrot.lane.b32.xlu1 %v818_v53, %s2846_s10  ;;  %vm1176_vm9 = vcmask 1041408   ;;  %vm1151_vm10 = vcmask 146432  }
  0x90   : > { %v541_v34 = vmax.f32 %v424_v7, %v540_v19  ;;  %v485_v37 = vadd.f32 %v484_v22, %v419_v49  ;;  %v570_v41 = vmax.f32 %v425_v20, %v569_v26  ;;  %v3220_v49 = vld [vmem:[%s3110_s15 + $0x38] sm:$0xff]  ;;  %v3236_v19 = vld [vmem:[%s3100_s11 + $0x100] sm:$0xff]  ;;  %v3247_v26 = vld [vmem:[%s3110_s15 + $0x50] sm:$0xff] }
  0x91   : > { %v457_v46 = vadd.f32 %v456_v36, %v420_v54  ;;  %v675_v57 = vmax.f32 %v616_v43, %v3220_v49  ;;  %819 = vrot.lane.b32.xlu0 %v818_v53, %s2847_s1  ;;  %v640_v32 = vadd.f32 %v639_v1, %v617_v38  ;;  %v3259_v36 = vld [vmem:[%s3100_s11 + $0x118] sm:$0xff]  ;;  %v3266_v43 = vld [vmem:[%s3110_s15 + $0x68] sm:$0xff]  ;;  %v3269_v38 = vld [vmem:[%s3110_s15 + $0x70] sm:$0xff] }
  0x92   : > { %v542_v44 = vmax.f32 %v426_v27, %v541_v34  ;;  %v486_v47 = vadd.f32 %v485_v37, %v421_v56  ;;  %v571_v51 = vmax.f32 %v427_v35, %v570_v41  ;;  %v3230_v56 = vld [vmem:[%s3110_s15 + $0x40] sm:$0xff]  ;;  %v3256_v34 = vld [vmem:[%s3100_s11 + $0x110] sm:$0xff] }
  0x93   : > { %v458_v61 = vadd.f32 %v457_v46, %v422_v60  ;;  %v676_v60 = vmax.f32 %v672_v3, %v3230_v56  ;;  %v3272_v3 = vld [vmem:[%s3110_s15 + $0x78] sm:$0xff]  ;;  %v3276_v46 = vld [vmem:[%s3100_s11 + $0x120] sm:$0xff]  ;;  %944 = vrot.lane.b32.xlu1 %v818_v53, %s2848_s20  ;;  %v3297_v53 = vld [vmem:[%s3110_s15 + $0xa8] sm:$0xff] }
  0x94   : > { %v543_v58 = vmax.f32 %v3214_v42, %v542_v44  ;;  %v487_v54 = vadd.f32 %v486_v47, %v423_v62  ;;  %v572_v6 = vmax.f32 %v429_v45, %v571_v51  ;;  %v677_v62 = vmax.f32 %v673_v5, %v3233_v63  ;;  %v3279_v47 = vld [vmem:[%s3100_s11 + $0x128] sm:$0xff] }
  0x95   : > { %v459_v24 = vadd.f32 %v458_v61, %v424_v7  ;;  %v678_v7 = vmax.f32 %v674_v55, %v3247_v26  ;;  %v680_v37 = vmax.f32 %v676_v60, %v3253_v30  ;;  %v641_v5 = vadd.f32 %v640_v32, %v618_v39  ;;  %v3294_v61 = vld [vmem:[%s3110_s15 + $0x90] sm:$0xff]  ;;  %v439_v60 = vld [vmem:[%s3100_s11 + $0x138] sm:$0xff] }
  0x96   : > { %v544_v22 = vmax.f32 %v3223_v52, %v543_v58  ;;  %v488_v25 = vadd.f32 %v487_v54, %v425_v20  ;;  %v573_v33 = vmax.f32 %v431_v59, %v572_v6  ;;  %v679_v20 = vmax.f32 %v675_v57, %v3250_v29  ;;  %v3291_v58 = vld [vmem:[%s3110_s15 + $0x88] sm:$0xff]  ;;  %v438_v6 = vld [vmem:[%s3100_s11 + $0x130] sm:$0xff] }
  0x97   : > { %v460_v41 = vadd.f32 %v459_v24, %v426_v27  ;;  %v3283_v27 = vld [vmem:[%s3110_s15 + $0x80] sm:$0xff]  ;;  %v682_v50 = vmax.f32 %v678_v7, %v3269_v38  ;;  %v642_v54 = vadd.f32 %v641_v5, %v619_v48  ;;  %v3317_v7 = vld [vmem:[%s3110_s15 + $0xb8] sm:$0xff]  ;;  %1102 = vrot.lane.b32.xlu1 %v3168_v31, %s2849_s16  ;;  %v441_v5 = vld [vmem:[%s3100_s11 + $0x148] sm:$0xff] }
  0x98   : > { %v545_v40 = vmax.f32 %v3236_v19, %v544_v22  ;;  %v489_v4 = vadd.f32 %v488_v25, %v427_v35  ;;  %v574_v44 = vmax.f32 %v3239_v21, %v573_v33  ;;  %v681_v35 = vmax.f32 %v677_v62, %v3266_v43  ;;  %v3303_v62 = vld [vmem:[%s3110_s15 + $0x98] sm:$0xff]  ;;  %v3311_v48 = vld [vmem:[%s3110_s15 + $0xa0] sm:$0xff]  ;;  %v3314_v33 = vld [vmem:[%s3110_s15 + $0xb0] sm:$0xff]  ;;  %s2753_s15 = scalar_lea.vmem %s2752_s12, 12288 }
  0x99   : > { %v683_v39 = vmax.f32 %v679_v20, %v3272_v3  ;;  %v461_v55 = vadd.f32 %v460_v41, %v3214_v42  ;;  %v684_v42 = vmax.f32 %v680_v37, %v3283_v27  ;;  %v686_v22 = vmax.f32 %v682_v50, %v3294_v61  ;;  %v707_v31 = vld [vmem:[%s3333_s26] sm:$0xff]  ;;  %v3337_v50 = vld [vmem:[%s3333_s26 + $0x8] sm:$0xff] }
  0x9a   : > { %v546_v51 = vmax.f32 %v3256_v34, %v545_v40  ;;  %v490_v57 = vadd.f32 %v489_v4, %v429_v45  ;;  %v575_v1 = vmax.f32 %v3259_v36, %v574_v44  ;;  %v685_v45 = vmax.f32 %v681_v35, %v3291_v58  ;;  %v440_v40 = vld [vmem:[%s3100_s11 + $0x140] sm:$0xff] }
  0x9b   : > { %v462_v25 = vadd.f32 %v461_v55, %v3223_v52  ;;  %v643_v20 = vadd.f32 %v642_v54, %v3220_v49  ;;  %v687_v52 = vmax.f32 %v683_v39, %v3303_v62  ;;  %v690_v55 = vmax.f32 %v686_v22, %v3314_v33  ;;  %v444_v22 = vld [vmem:[%s3100_s11 + $0x160] sm:$0xff] }
  0x9c   : > { %v547_v24 = vmax.f32 %v3276_v46, %v546_v51  ;;  %v491_v32 = vadd.f32 %v490_v57, %v431_v59  ;;  %v576_v37 = vmax.f32 %v3279_v47, %v575_v1  ;;  %v688_v59 = vmax.f32 %v684_v42, %v3311_v48  ;;  %v442_v51 = vld [vmem:[%s3100_s11 + $0x150] sm:$0xff]  ;;  %v443_v57 = vld [vmem:[%s3100_s11 + $0x158] sm:$0xff] }
  0x9d   : > { %v689_v41 = vmax.f32 %v685_v45, %v3297_v53  ;;  %v463_v44 = vadd.f32 %v462_v25, %v3236_v19  ;;  %v644_v35 = vadd.f32 %v643_v20, %v3230_v56  ;;  %v691_v19 = vmax.f32 %v687_v52, %v3317_v7  ;;  %v3347_v45 = vld [vmem:[%s3333_s26 + $0x10] sm:$0xff] }
  0x9e   : > { %v548_v4 = vmax.f32 %v438_v6, %v547_v24  ;;  %v492_v49 = vadd.f32 %v491_v32, %v3239_v21  ;;  %v577_v39 = vmax.f32 %v439_v60, %v576_v37  ;;  %v711_v24 = vld [vmem:[%s3333_s26 + $0x20] sm:$0xff]  ;;  %v731_v20 = vadd.f32 %v3337_v50, %v707_v31 }
  0x9f   : > { %v692_v21 = vmax.f32 %v688_v59, %v689_v41  ;;  %v464_v54 = vadd.f32 %v463_v44, %v3256_v34  ;;  %v645_v42 = vadd.f32 %v644_v35, %v3233_v63  ;;  %v693_v32 = vmax.f32 %v690_v55, %v691_v19  ;;  %v445_v59 = vld [vmem:[%s3100_s11 + $0x168] sm:$0xff]  ;;  %v710_v41 = vld [vmem:[%s3333_s26 + $0x18] sm:$0xff] }
  0xa0   : > { %v549_v56 = vmax.f32 %v440_v40, %v548_v4  ;;  %v493_v1 = vadd.f32 %v492_v49, %v3259_v36  ;;  %v578_v25 = vmax.f32 %v441_v5, %v577_v39  ;;  %v766_v37 = vmax.f32 %v707_v31, %v711_v24  ;;  %v712_v4 = vld [vmem:[%s3333_s26 + $0x28] sm:$0xff]  ;;  %v446_v49 = vld [vmem:[%s3100_s11 + $0x170] sm:$0xff]  ;;  %v447_v19 = vld [vmem:[%s3100_s11 + $0x178] sm:$0xff] }
  0xa1   : > { %v465_v34 = vadd.f32 %v464_v54, %v3276_v46  ;;  %v646_v63 = vadd.f32 %v645_v42, %v3247_v26  ;;  %v694_v35 = vmax.f32 %v692_v21, %v693_v32  ;;  %v732_v39 = vadd.f32 %v731_v20, %v3347_v45  ;;  %v713_v54 = vld [vmem:[%s3333_s26 + $0x30] sm:$0xff] }
  0xa2   : > { %v550_v52 = vmax.f32 %v442_v51, %v549_v56  ;;  %v494_v36 = vadd.f32 %v493_v1, %v3279_v47  ;;  %v579_v44 = vmax.f32 %v443_v57, %v578_v25  ;;  %v767_v55 = vmax.f32 %v3337_v50, %v712_v4 }
  0xa3   : > { %v466_v56 = vadd.f32 %v465_v34, %v438_v6  ;;  %v647_v46 = vadd.f32 %v646_v63, %v3250_v29  ;;  %v695_v1 = vrot.slane %v694_v35, 4  ;;  %v733_v26 = vadd.f32 %v732_v39, %v710_v41 }
  0xa4   : > { %v551_v31 = vmax.f32 %v444_v22, %v550_v52  ;;  %v495_v0 = vadd.f32 %v494_v36, %v439_v60  ;;  %v580_v47 = vmax.f32 %v445_v59, %v579_v44  ;;  %v768_v42 = vmax.f32 %v3347_v45, %v713_v54  ;;  %v715_v45 = vld [vmem:[%s3333_s26 + $0x40] sm:$0xff] }
  0xa5   : > { %v467_v21 = vadd.f32 %v466_v56, %v440_v40  ;;  %v648_v20 = vadd.f32 %v647_v46, %v3253_v30  ;;  %v696_v52 = vmax.f32 %v694_v35, %v695_v1  ;;  %v734_v6 = vadd.f32 %v733_v26, %v711_v24 }
  0xa6   : > { %v552_v25 = vmax.f32 %v446_v49, %v551_v31  ;;  %v496_v32 = vadd.f32 %v495_v0, %v441_v5  ;;  %v581_v50 = vmax.f32 %v447_v19, %v580_v47  ;;  %v769_v60 = vmax.f32 %v710_v41, %v714_v28  ;;  %v719_v47 = vld [vmem:[%s3333_s26 + $0x60] sm:$0xff] }
  0xa7   : > { %v468_v34 = vadd.f32 %v467_v21, %v442_v51  ;;  %v649_v63 = vadd.f32 %v648_v20, %v3266_v43  ;;  %v697_v30 = vrot.slane %v696_v52, 2  ;;  %v735_v40 = vadd.f32 %v734_v6, %v712_v4  ;;  %v720_v20 = vld [vmem:[%s3333_s26 + $0x68] sm:$0xff] }
  0xa8   : > { %v497_v29 = vadd.f32 %v496_v32, %v443_v57  ;;  %v553_v36 = vmax.f32 %v532_v11, %v552_v25  ;;  %v582_v0 = vmax.f32 %v561_v23, %v581_v50  ;;  %v770_v5 = vmax.f32 %v766_v37, %v715_v45  ;;  %v721_v50 = vld [vmem:[%s3333_s26 + $0x70] sm:$0xff] }
  0xa9   : > { %v469_v44 = vadd.f32 %v468_v34, %v444_v22  ;;  %v650_v8 = vadd.f32 %v649_v63, %v3269_v38  ;;  %v3890_v11 = vmax.f32 %v3141_v14, %v3153_v18  ;;  %v698_v57 = vmax.f32 %v696_v52, %v697_v30  ;;  %v718_v18 = vld [vmem:[%s3333_s26 + $0x58] sm:$0xff] }
  0xaa   : > { %v498_v24 = vadd.f32 %v497_v29, %v445_v59  ;;  %v554_v51 = vmax.f32 %v533_v12, %v553_v36  ;;  %v736_v9 = vadd.f32 %v735_v40, %v713_v54  ;;  %v771_v16 = vmax.f32 %v767_v55, %v716_v15  ;;  %v717_v59 = vld [vmem:[%s3333_s26 + $0x50] sm:$0xff] }
  0xab   : > { %v583_v43 = vmax.f32 %v3890_v11, %v582_v0  ;;  %v470_v23 = vadd.f32 %v469_v44, %v446_v49  ;;  %v651_v22 = vadd.f32 %v650_v8, %v3272_v3  ;;  %v699_v13 = vrot.slane %v698_v57, 1  ;;  %v723_v0 = vld [vmem:[%s3333_s26 + $0x80] sm:$0xff]  ;;  %v725_v11 = vld [vmem:[%s3333_s26 + $0x90] sm:$0xff] }
  0xac   : > { %v499_v41 = vadd.f32 %v498_v24, %v447_v19  ;;  %v555_v37 = vrot.slane %v554_v51, 4  ;;  %v737_v17 = vadd.f32 %v736_v9, %v714_v28  ;;  %v772_v12 = vmax.f32 %v768_v42, %v717_v59  ;;  %v726_v9 = vld [vmem:[%s3333_s26 + $0x98] sm:$0xff] }
  0xad   : > { %v584_v4 = vrot.slane %v583_v43, 4  ;;  %v471_v38 = vrot.slane %v470_v23, 4  ;;  %v652_v14 = vadd.f32 %v651_v22, %v3283_v27  ;;  %v700_v56 = vmax.f32 %v698_v57, %v699_v13  ;;  %v730_v13 = vld [vmem:[%s3333_s26 + $0xb8] sm:$0xff] }
  0xae   : > { %v500_v35 = vrot.slane %v499_v41, 4  ;;  %v556_v39 = vmax.f32 %v554_v51, %v555_v37  ;;  %v738_v49 = vadd.f32 %v737_v17, %v715_v45  ;;  %v773_v55 = vmax.f32 %v769_v60, %v718_v18  ;;  %v722_v45 = vld [vmem:[%s3333_s26 + $0x78] sm:$0xff] }
  0xaf   : > { %v585_v31 = vmax.f32 %v583_v43, %v584_v4  ;;  %v472_v19 = vadd.f32 %v471_v38, %v470_v23  ;;  %v653_v54 = vadd.f32 %v652_v14, %v3291_v58  ;;  %v702_v1 = vmul.f32 0.0, %v700_v56  ;;  %v728_v43 = vld [vmem:[%s3333_s26 + $0xa8] sm:$0xff]  ;;  %v727_v4 = vld [vmem:[%s3333_s26 + $0xa0] sm:$0xff] }
  0xb0   : > { %v501_v3 = vadd.f32 %v500_v35, %v499_v41  ;;  %v557_v46 = vrot.slane %v556_v39, 2  ;;  %v739_v26 = vadd.f32 %v738_v49, %v716_v15  ;;  %v774_v42 = vmax.f32 %v770_v5, %v719_v47  ;;  %v724_v15 = vld [vmem:[%s3333_s26 + $0x88] sm:$0xff] }
  0xb1   : > { %v586_v28 = vrot.slane %v585_v31, 2  ;;  %v473_v25 = vrot.slane %v472_v19, 2  ;;  %v654_v32 = vadd.f32 %v653_v54, %v3294_v61  ;;  %703 = vst [vmem:[#allocation2 + $0x1] sm:$0x1] %v702_v1  ;;  %v775_v60 = vmax.f32 %v771_v16, %v720_v20 }
  0xb2   : > { %v502_v27 = vrot.slane %v501_v3, 2  ;;  %v558_v21 = vmax.f32 %v556_v39, %v557_v46  ;;  %v740_v6 = vadd.f32 %v739_v26, %v717_v59  ;;  %v776_v58 = vmax.f32 %v772_v12, %v721_v50 }
  0xb3   : > { %v587_v52 = vmax.f32 %v585_v31, %v586_v28  ;;  %v474_v34 = vadd.f32 %v473_v25, %v472_v19  ;;  %v655_v63 = vadd.f32 %v654_v32, %v3303_v62  ;;  %v777_v40 = vmax.f32 %v773_v55, %v722_v45  ;;  %v729_v62 = vld [vmem:[%s3333_s26 + $0xb0] sm:$0xff] }
  0xb4   : > { %v503_v29 = vadd.f32 %v502_v27, %v501_v3  ;;  %v559_v36 = vrot.slane %v558_v21, 1  ;;  %v741_v30 = vadd.f32 %v740_v6, %v718_v18  ;;  %v778_v5 = vmax.f32 %v774_v42, %v723_v0 }
  0xb5   : > { %v588_v61 = vrot.slane %v587_v52, 1  ;;  %v475_v44 = vrot.slane %v474_v34, 1  ;;  %v656_v8 = vadd.f32 %v655_v63, %v3311_v48  ;;  %v779_v23 = vmax.f32 %v775_v60, %v724_v15 }
  0xb6   : > { %v504_v24 = vrot.slane %v503_v29, 1  ;;  %v560_v51 = vmax.f32 %v558_v21, %v559_v36  ;;  %v742_v16 = vadd.f32 %v741_v30, %v719_v47  ;;  %v780_v41 = vmax.f32 %v776_v58, %v725_v11 }
  0xb7   : > { %v589_v57 = vmax.f32 %v587_v52, %v588_v61  ;;  %v476_v37 = vadd.f32 %v475_v44, %v474_v34  ;;  %v657_v59 = vadd.f32 %v656_v8, %v3297_v53  ;;  %v781_v17 = vmax.f32 %v777_v40, %v726_v9 }
  0xb8   : > { %v505_v22 = vadd.f32 %v504_v24, %v503_v29  ;;  %v743_v38 = vadd.f32 %v742_v16, %v720_v20  ;;  %v782_v35 = vmax.f32 %v778_v5, %v727_v4  ;;  %v783_v48 = vmax.f32 %v779_v23, %v728_v43 }
  0xb9   : > { %v592_v12 = vcombine.low %v560_v51, %v589_v57  ;;  %v506_v39 = vmul.f32 0.0052083335, %v476_v37  ;;  %v658_v18 = vadd.f32 %v657_v59, %v3314_v33  ;;  %v784_v31 = vmax.f32 %v780_v41, %v729_v62 }
  0xba   : > { %v507_v14 = vmul.f32 0.0052083335, %v505_v22  ;;  %v744_v49 = vadd.f32 %v743_v38, %v721_v50  ;;  %v785_v55 = vmax.f32 %v781_v17, %v730_v13  ;;  %v786_v19 = vmax.f32 %v782_v35, %v783_v48 }
  0xbb   : > { %v599_v56 = vrot.slane %v592_v12, %v3187_v2  ;;  %v3891_v3 = vlaneseq  ;;  %v659_v46 = vadd.f32 %v658_v18, %v3317_v7 }
  0xbc   : > { %v510_v53 = vcombine.low %v506_v39, %v507_v14  ;;  %v745_v47 = vadd.f32 %v744_v49, %v722_v45  ;;  %v787_v28 = vmax.f32 %v784_v31, %v785_v55 }
  0xbd   : > { %vm528_vm0 = vcmp.lt.s32.totalorder %v3891_v3, 256  ;;  %v606_v54 = vrot.slane %v599_v56, %v3187_v2  ;;  %v660_v26 = vrot.slane %v659_v46, 4 }
  0xbe   : > { %v517_v1 = vrot.slane %v510_v53, %v3187_v2  ;;  %v746_v33 = vadd.f32 %v745_v47, %v723_v0  ;;  %v788_v42 = vmax.f32 %v786_v19, %v787_v28 }
  0xbf   : > { %609 = vst.msk [vmem:[#allocation2 + $0x3] ss:$2 sm:$0x3] %vm528_vm0, %v606_v54  ;;  %v661_v27 = vadd.f32 %v660_v26, %v659_v46 }
  0xc0   : > { %v524_v25 = vrot.slane %v517_v1, %v3187_v2  ;;  %v747_v21 = vadd.f32 %v746_v33, %v724_v15  ;;  %v789_v32 = vrot.slane %v788_v42, 4 }
  0xc1   : > { %v662_v20 = vrot.slane %v661_v27, 2 }
  0xc2   : > { %531 = vst.msk [vmem:[#allocation2 + $0x2] ss:$2 sm:$0x3] %vm528_vm0, %v524_v25  ;;  %v748_v50 = vadd.f32 %v747_v21, %v725_v11  ;;  %v790_v52 = vmax.f32 %v788_v42, %v789_v32 }
  0xc3   : > { %v663_v7 = vadd.f32 %v662_v20, %v661_v27 }
  0xc4   : > { %v749_v6 = vadd.f32 %v748_v50, %v726_v9  ;;  %v791_v60 = vrot.slane %v790_v52, 2 }
  0xc5   : > { %v664_v58 = vrot.slane %v663_v7, 1 }
  0xc6   : > { %v750_v34 = vadd.f32 %v749_v6, %v727_v4  ;;  %v792_v29 = vmax.f32 %v790_v52, %v791_v60 }
  0xc7   : > { %v665_v36 = vadd.f32 %v664_v58, %v663_v7 }
  0xc8   : > { %v751_v63 = vadd.f32 %v750_v34, %v728_v43  ;;  %v793_v45 = vrot.slane %v792_v29, 1 }
  0xc9   : > { %v670_v0 = vmul.f32 0.0, %v665_v36 }
  0xca   : > { %v752_v61 = vadd.f32 %v751_v63, %v729_v62  ;;  %v794_v30 = vmax.f32 %v792_v29, %v793_v45 }
  0xcb   : > { %671 = vst [vmem:[#allocation2] sm:$0x1] %v670_v0 }
  0xcc   : > { %v753_v2 = vadd.f32 %v752_v61, %v730_v13  ;;  %v796_v40 = vmul.f32 0.0, %v794_v30 }
  0xce   : > { %v754_v5 = vrot.slane %v753_v2, 4  ;;  %797 = vst [vmem:[#allocation2 + $0x7] sm:$0x1] %v796_v40 }
  0xd0   : > { %v755_v44 = vadd.f32 %v754_v5, %v753_v2  ;;  %v2265_v2 = vld.sshfl [vmem:[#allocation2 + $0x2] sm:$0x33 pattern:$0x76325410] }
  0xd1   : > { %994 = vst [vmem:[#allocation3 + $0x10] sm:$0x3] %v2265_v2 }
  0xd2   : > { %v856_v24 = vld [vmem:[#allocation2] sm:$0x3f]  ;;  %v756_v51 = vrot.slane %v755_v44, 2 }
  0xd3   : > { %v872_v8 = vrot.slane %v856_v24, %v3131_v10  ;;  %v858_v9 = vcombine.low %v856_v24, %v856_v24  ;;  %v887_v13 = vld [vmem:[#allocation2] sm:$0x3f] }
  0xd4   : > { %v757_v15 = vadd.f32 %v756_v51, %v755_v44  ;;  %v801_v53 = vld [vmem:[#allocation2] sm:$0x3f]  ;;  %v991_v44 = vcombine.high %v2265_v2, %v2265_v2 }
  0xd5   : > { %878 = vrot.lane.b32.xlu1 %v872_v8, %s2850_s7  ;;  %v865_v41 = vrot.slane %v858_v9, %v3131_v10  ;;  %v943_v33 = vld [vmem:[#allocation2] sm:$0x3f] }
  0xd6   : > { %v758_v11 = vrot.slane %v757_v15, 1  ;;  %995 = vst [vmem:[#allocation3 + $0x18] sm:$0x3] %v991_v44  ;;  %v1138_v44 = vld [vmem:[%s3855_s4 + $0x8] sm:$0xff] }
  0xd7   : > { %v873_v59 = vcombine.high %v865_v41, %v865_v41 }
  0xd8   : > { %v759_v43 = vadd.f32 %v758_v11, %v757_v15 }
  0xda   : > { %v764_v57 = vmul.f32 0.0, %v759_v43 }
  0xdc   : > { %765 = vst [vmem:[#allocation2 + $0x6] sm:$0x1] %v764_v57 }
  0xe3   : > { %v1069_v62 = vld [vmem:[#allocation2 + $0x2] sm:$0x3f] }
  0xe4   : > { %v1071_v16 = vcombine.low %v1069_v62, %v1069_v62  ;;  %v1085_v23 = vrot.slane %v1069_v62, %v3131_v10  ;;  %v996_v48 = vld [vmem:[#allocation2 + $0x2] sm:$0x3f] }
  0xe5   : > { %v1032_v19 = vld [vmem:[#allocation2 + $0x2] sm:$0x3f] }
  0xe6   : > { %v3416_v37 = vrot.slane %v1071_v16, %v3131_v10  ;;  %v1087_v22 = vcombine.low %v1085_v23, %v1085_v23  ;;  %v1101_v40 = vld [vmem:[#allocation2 + $0x2] sm:$0x3f] }
  0xe8   : > { %1090 = vrot.lane.b32.xlu0 %v3416_v37, %s2851_s23  ;;  %1092 = vrot.lane.b32.xlu1 %v1087_v22, %s2851_s23  ;;  %v1086_v62 = vcombine.low %v3416_v37, %v3416_v37  ;;  %v2852_v22 = vmov 0.0  }
  0xe9   : > { %1247 = vmatprep.mubr.f32.mxu0 %v2852_v22  ;;  %1271 = vmatprep.mubr.f32.mxu1 %v2852_v22 }
  0xec   : > { %876 = vrot.lane.b32.xlu0 %v873_v59, %s2850_s7  ;;  %874 = vrot.lane.b32.xlu1 %v865_v41, %s2850_s7 }
  0xfb   : > { %v906_v4 = vpop.permute.xlu0 %905 }
  0xfc   : > { %v907_v17 = vrot.slane %v906_v4, 6 }
  0xfe   : > { %v909_v12 = vsel %vm908_vm1, %v907_v17, %v906_v4 }
  0xff   : > { %v911_v38 = vmul.f32 %v909_v12, %v887_v13  ;;  %v998_v35 = vpop.permute.xlu0 %997 }
 0x100   : > { %v999_v39 = vrot.slane %v998_v35, 6 }
 0x101   : > { %v920_v14 = vrot.slane %v911_v38, %v3131_v10  ;;  %v1034_v49 = vpop.permute.xlu1 %1033  ;;  %v913_v7 = vcombine.high %v911_v38, %v911_v38 }
 0x102   : > { %v1000_v18 = vsel %vm975_vm2, %v999_v39, %v998_v35  ;;  %v1035_v3 = vrot.slane %v1034_v49, 6 }
 0x103   : > { %v1002_v31 = vmul.f32 %v1000_v18, %v996_v48  ;;  %932 = vrot.lane.b32.xlu0 %v920_v14, %s2846_s10  ;;  %v820_v55 = vpop.permute.xlu0 %819  ;;  %v927_v63 = vrot.slane %v913_v7, %v3131_v10  ;;  %v928_v51 = vcombine.low %v920_v14, %v920_v14 }
 0x104   : > { %v821_v46 = vrot.slane %v820_v55, 6  ;;  %v1036_v54 = vsel %vm936_vm3, %v1035_v3, %v1034_v49 }
 0x105   : > { %v1018_v56 = vrot.slane %v1002_v31, %v3131_v10  ;;  %v1038_v28 = vmul.f32 %v1036_v54, %v1032_v19  ;;  %v945_v26 = vpop.permute.xlu1 %944  ;;  %v929_v61 = vcombine.low %v927_v63, %v927_v63  ;;  %v1004_v24 = vcombine.low %v1002_v31, %v1002_v31 }
 0x106   : > { %v823_v47 = vsel %vm822_vm4, %v821_v46, %v820_v55  ;;  %v946_v42 = vrot.slane %v945_v26, 6 }
 0x107   : > { %1024 = vrot.lane.b32.xlu1 %v1018_v56, %s2848_s20  ;;  %v825_v1 = vmul.f32 %v823_v47, %v801_v53  ;;  %v1047_v27 = vrot.slane %v1038_v28, %v3131_v10  ;;  %v1040_v29 = vcombine.high %v1038_v28, %v1038_v28  ;;  %v1011_v11 = vrot.slane %v1004_v24, %v3131_v10 }
 0x108   : > { %v948_v21 = vsel %vm947_vm5, %v946_v42, %v945_v26 }
 0x109   : > { %v827_v25 = vcombine.high %v825_v1, %v825_v1  ;;  %v950_v32 = vmul.f32 %v948_v21, %v943_v33  ;;  %1059 = vrot.lane.b32.xlu0 %v1047_v27, %s2844_s14  ;;  %v834_v20 = vrot.slane %v825_v1, %v3131_v10  ;;  %v1103_v34 = vpop.permute.xlu1 %1102  ;;  %v1055_v36 = vcombine.low %v1047_v27, %v1047_v27 }
 0x10a   : > { %v1104_v45 = vrot.slane %v1103_v34, 6  ;;  %v1054_v30 = vrot.slane %v1040_v29, %v3131_v10  ;;  %v1019_v9 = vcombine.high %v1011_v11, %v1011_v11 }
 0x10b   : > { %v841_v50 = vrot.slane %v827_v25, %v3131_v10  ;;  %v966_v52 = vrot.slane %v950_v32, %v3131_v10  ;;  %v952_v60 = vcombine.low %v950_v32, %v950_v32  ;;  %v842_v58 = vcombine.high %v834_v20, %v834_v20 }
 0x10c   : > { %v1105_v5 = vsel %vm849_vm6, %v1104_v45, %v1103_v34  ;;  %v1056_v15 = vcombine.low %v1054_v30, %v1054_v30 }
 0x10d   : > { %847 = vrot.lane.b32.xlu1 %v841_v50, %s2849_s16  ;;  %843 = vrot.lane.b32.xlu0 %v834_v20, %s2849_s16  ;;  %v968_v6 = vcombine.low %v966_v52, %v966_v52  ;;  %v959_v0 = vrot.slane %v952_v60, %v3131_v10  ;;  %v1107_v8 = vmul.f32 %v1105_v5, %v1101_v40  ;;  %v1137_v40 = vld [vmem:[%s3855_s4] sm:$0xff] }
 0x10e   : > { %v1141_v5 = vld [vmem:[%s3855_s4 + $0x20] sm:$0xff] }
 0x10f   : > { %v1116_v43 = vrot.slane %v1107_v8, %v3131_v10  ;;  %v967_v57 = vcombine.low %v959_v0, %v959_v0  ;;  %v1109_v23 = vcombine.high %v1107_v8, %v1107_v8  ;;  %v1142_v8 = vld [vmem:[%s3855_s4 + $0x28] sm:$0xff] }
 0x111   : > { %973 = vrot.lane.b32.xlu1 %v968_v6, %s2845_s13  ;;  %845 = vrot.lane.b32.xlu0 %v842_v58, %s2849_s16  ;;  %v1124_v16 = vcombine.high %v1116_v43, %v1116_v43  ;;  %v1123_v41 = vrot.slane %v1109_v23, %v3131_v10  ;;  %v1773_v23 = vld [vmem:[%s3855_s4 + $0x80] sm:$0xff]  ;;  %s3640_s16 = scalar_lea.vmem [#allocation10], %s2371_s28  ;;  %s2373_s28 = smul.u32 6144, %s2825_s21 }
 0x112   : > { %s2106_s26 = sshll.u32 %s3640_s16, 4  ;;  %s3799_s26 = int_to_ptr.vmem [resolvable:$true] %s2106_s26 }
 0x113   : > { %s3796_s21 = scalar_lea.hbm %s3856_s5, %s2373_s28  ;;  %s2747_s27 = scalar_lea.vmem %s3799_s26, 6144 }
 0x114   : > { %p2748_p0 = scmp.ne.s32.totalorder %s3799_s26, %s2747_s27  ;;  %p2754_p12 = scmp.lt.s32.totalorder %s3799_s26, %s2752_s12 }
 0x115   : > { %1057 = vrot.lane.b32.xlu1 %v1055_v36, %s2844_s14  ;;  %971 = vrot.lane.b32.xlu0 %v959_v0, %s2845_s13  ;;  %p2755_p4 = scmp.lt.s32.totalorder %s2753_s15, %s2747_s27 }
 0x116   : > { %p2749_p8 = pnand %p2748_p0, %p3892_p6 }
 0x117   : > { %p2756_p10 = por %p2755_p4, %p2754_p12 }
 0x118   : > { %p2750_p9 = pneg %p2749_p8 }
 0x119   : > { %934 = vrot.lane.b32.xlu1 %v929_v61, %s2846_s10  ;;  %930 = vrot.lane.b32.xlu0 %v928_v51, %s2846_s10 }
 0x11a   : > { %p2757_p13 = pnand %p2756_p10, %p2750_p9 }
 0x11d   : > { %1061 = vrot.lane.b32.xlu1 %v1056_v15, %s2844_s14  ;;  %1020 = vrot.lane.b32.xlu0 %v1011_v11, %s2848_s20 }
 0x121   : > { %969 = vrot.lane.b32.xlu1 %v967_v57, %s2845_s13  ;;  %1022 = vrot.lane.b32.xlu0 %v1019_v9, %s2848_s20  ;;  %v1143_v57 = vld [vmem:[%s3855_s4 + $0x30] sm:$0xff]  ;;  %v1140_v9 = vld [vmem:[%s3855_s4 + $0x18] sm:$0xff] }
 0x125   : > { %1127 = vrot.lane.b32.xlu1 %v1124_v16, %s2847_s1  ;;  %1088 = vrot.lane.b32.xlu0 %v1086_v62, %s2851_s23  ;;  %v1144_v62 = vld [vmem:[%s3855_s4 + $0x38] sm:$0xff]  ;;  %v1456_v16 = vld [vmem:[%s3855_s4 + $0x40] sm:$0xff] }
 0x129   : > { %1125 = vrot.lane.b32.xlu1 %v1116_v43, %s2847_s1  ;;  %1129 = vrot.lane.b32.xlu0 %v1123_v41, %s2847_s1  ;;  %v1139_v43 = vld [vmem:[%s3855_s4 + $0x10] sm:$0xff]  ;;  %v1457_v41 = vld [vmem:[%s3855_s4 + $0x48] sm:$0xff] }
 0x147   : > { %v879_v59 = vpop.permute.xlu1 %878 }
 0x15a   : > { %v1091_v37 = vpop.permute.xlu0 %1090  ;;  %v1093_v4 = vpop.permute.xlu1 %1092 }
 0x15b   : > { %v1096_v13 = vsel %vm1094_vm7, %v1091_v37, %v1093_v4  ;;  %v1775_v4 = vld [vmem:[%s3855_s4 + $0x90] sm:$0xff] }
 0x15c   : > { %1100 = vst [vmem:[#allocation3 + $0x18] sm:$0xc0] %v1096_v13  ;;  %v1459_v13 = vld [vmem:[%s3855_s4 + $0x58] sm:$0xff] }
 0x15e   : > { %v877_v17 = vpop.permute.xlu0 %876  ;;  %v875_v12 = vpop.permute.xlu1 %874 }
 0x15f   : > { %v882_v10 = vsel %vm880_vm8, %v877_v17, %v879_v59  ;;  %v881_v38 = vsel %vm880_vm8, %v875_v12, %v877_v17  ;;  %v1774_v59 = vld [vmem:[%s3855_s4 + $0x88] sm:$0xff]  ;;  %v1776_v17 = vld [vmem:[%s3855_s4 + $0x98] sm:$0xff]  ;;  %v1460_v12 = vld [vmem:[%s3855_s4 + $0x60] sm:$0xff] }
 0x160   : > { %886 = vst [vmem:[#allocation3 + $0x8] sm:$0xc] %v882_v10  ;;  %885 = vst [vmem:[#allocation3] sm:$0xc] %v881_v38  ;;  %v1777_v10 = vld [vmem:[%s3855_s4 + $0xa0] sm:$0xff]  ;;  %v1461_v38 = vld [vmem:[%s3855_s4 + $0x68] sm:$0xff] }
 0x175   : > { %v933_v35 = vpop.permute.xlu0 %932 }
 0x179   : > { %v1025_v48 = vpop.permute.xlu1 %1024 }
 0x17b   : > { %v1060_v39 = vpop.permute.xlu0 %1059 }
 0x17f   : > { %v848_v14 = vpop.permute.xlu1 %847  ;;  %v844_v18 = vpop.permute.xlu0 %843 }
 0x183   : > { %v974_v31 = vpop.permute.xlu1 %973  ;;  %v846_v56 = vpop.permute.xlu0 %845 }
 0x184   : > { %v850_v49 = vsel %vm849_vm6, %v844_v18, %v846_v56  ;;  %v851_v55 = vsel %vm849_vm6, %v846_v56, %v848_v14  ;;  %v1463_v14 = vld [vmem:[%s3855_s4 + $0x78] sm:$0xff] }
 0x185   : > { %854 = vst [vmem:[#allocation3] sm:$0x3] %v850_v49  ;;  %855 = vst [vmem:[#allocation3 + $0x8] sm:$0x3] %v851_v55  ;;  %v1780_v18 = vld [vmem:[%s3855_s4 + $0xb8] sm:$0xff] }
 0x187   : > { %v1058_v19 = vpop.permute.xlu1 %1057  ;;  %v972_v53 = vpop.permute.xlu0 %971 }
 0x188   : > { %v1063_v3 = vsel %vm908_vm1, %v1058_v19, %v1060_v39  ;;  %v977_v46 = vsel %vm975_vm2, %v972_v53, %v974_v31 }
 0x189   : > { %1067 = vst [vmem:[#allocation3 + $0x10] sm:$0x30] %v1063_v3  ;;  %981 = vst [vmem:[#allocation3 + $0x8] sm:$0xc0] %v977_v46 }
 0x18b   : > { %v935_v54 = vpop.permute.xlu1 %934  ;;  %v931_v28 = vpop.permute.xlu0 %930 }
 0x18c   : > { %v938_v47 = vsel %vm936_vm3, %v933_v35, %v935_v54  ;;  %v937_v1 = vsel %vm936_vm3, %v931_v28, %v933_v35  ;;  %v1778_v35 = vld [vmem:[%s3855_s4 + $0xa8] sm:$0xff] }
 0x18d   : > { %942 = vst [vmem:[#allocation3 + $0x8] sm:$0x30] %v938_v47  ;;  %941 = vst [vmem:[#allocation3] sm:$0x30] %v937_v1 }
 0x18f   : > { %v1062_v26 = vpop.permute.xlu1 %1061  ;;  %v1021_v42 = vpop.permute.xlu0 %1020 }
 0x190   : > { %v1064_v33 = vsel %vm908_vm1, %v1060_v39, %v1062_v26  ;;  %v1779_v39 = vld [vmem:[%s3855_s4 + $0xb0] sm:$0xff] }
 0x191   : > { %1068 = vst [vmem:[#allocation3 + $0x18] sm:$0x30] %v1064_v33 }
 0x193   : > { %v970_v25 = vpop.permute.xlu1 %969  ;;  %v1023_v21 = vpop.permute.xlu0 %1022 }
 0x194   : > { %v976_v27 = vsel %vm975_vm2, %v970_v25, %v972_v53  ;;  %v1026_v32 = vsel %vm947_vm5, %v1021_v42, %v1023_v21  ;;  %v1027_v20 = vsel %vm947_vm5, %v1023_v21, %v1025_v48  ;;  %v1146_v29 = vld [vmem:[#allocation3 + $0x8] sm:$0xff] }
 0x195   : > { %980 = vst [vmem:[#allocation3] sm:$0xc0] %v976_v27  ;;  %1030 = vst [vmem:[#allocation3 + $0x10] sm:$0xc] %v1026_v32  ;;  %v1462_v48 = vld [vmem:[%s3855_s4 + $0x70] sm:$0xff] }
 0x196   : > { %1031 = vst [vmem:[#allocation3 + $0x18] sm:$0xc] %v1027_v20 }
 0x197   : > { %v1128_v50 = vpop.permute.xlu1 %1127  ;;  %v1089_v52 = vpop.permute.xlu0 %1088 }
 0x198   : > { %v1095_v7 = vsel %vm1094_vm7, %v1089_v52, %v1091_v37  ;;  %v1458_v37 = vld [vmem:[%s3855_s4 + $0x50] sm:$0xff] }
 0x199   : > { %1099 = vst [vmem:[#allocation3 + $0x10] sm:$0xc0] %v1095_v7 }
 0x19b   : > { %v1126_v6 = vpop.permute.xlu1 %1125  ;;  %v1130_v58 = vpop.permute.xlu0 %1129 }
 0x19c   : > { %v1131_v60 = vsel %vm822_vm4, %v1126_v6, %v1128_v50  ;;  %v1132_v34 = vsel %vm822_vm4, %v1128_v50, %v1130_v58  ;;  %v1145_v45 = vld [vmem:[#allocation3] sm:$0xff] }
 0x19d   : > { %1135 = vst [vmem:[#allocation3 + $0x20] sm:$0x3] %v1131_v60  ;;  %v1148_v36 = vld [vmem:[#allocation3 + $0x18] sm:$0xff]  ;;  %1136 = vst [vmem:[#allocation3 + $0x28] sm:$0x3] %v1132_v34 }
 0x19e   : > { %v2349_v63 = vpack.c.bf16 %v1148_v36, %v1146_v29 }
 0x1a0   : > { %2350 = vmatprep.subr.bf16.mxu0 %v2349_v63  ;;  %2361 = vmatprep.subr.bf16.mxu1 %v2349_v63  ;;  %v1147_v0 = vld [vmem:[#allocation3 + $0x10] sm:$0xff] }
 0x1a1   : > { %v2351_v61 = vpack.c.bf16 %v1147_v0, %v1145_v45 }
 0x1a3   : > { %2352 = vmatpush1.bf16.msra.mxu0 %v2351_v61  ;;  %2363 = vmatpush1.bf16.msra.mxu1 %v2351_v61 }
 0x1a4   : > { %v1150_v30 = vld [vmem:[#allocation3 + $0x28] sm:$0x3]  ;;  %v1149_v2 = vld [vmem:[#allocation3 + $0x20] sm:$0x3] }
 0x1a5   : > { %2266 = vmatprep.subr.msk.mxu0 %vm1176_vm9, %v1150_v30  ;;  %2362 = vmatprep.subr.msk.mxu1 %vm1176_vm9, %v1150_v30  ;;  %v1469_v24 = vld [vmem:[#allocation3 + $0x28] sm:$0x3]  ;;  %v1468_v15 = vld [vmem:[#allocation3 + $0x20] sm:$0x3] }
 0x1a6   : > { %v1786_v51 = vld [vmem:[#allocation3 + $0x28] sm:$0x3]  ;;  %v1785_v11 = vld [vmem:[#allocation3 + $0x20] sm:$0x3] }
 0x1a7   : > { %2267 = vmatpush1.msk.msra.mxu0 %vm1176_vm9, %v1149_v2  ;;  %2364 = vmatpush1.msk.msra.mxu1 %vm1176_vm9, %v1149_v2 }
 0x1a8   : > { %2268 = vmatmul.mubr.msk.f32.vlgmr.msra.gmra.mrb[0].mxu0 %vm1151_vm10, %v1137_v40  ;;  %2272 = vmatmul.mubr.msk.f32.vlgmr.msra.gmra.mrb[0].mxu1 %vm1151_vm10, %v1141_v5 }
 0x1a9   : > { %2354 = vmatprep.subr.bf16.mxu1 %v2349_v63  ;;  %2358 = vmatprep.subr.bf16.mxu0 %v2349_v63 }
 0x1aa   : > { %2356 = vmatpush1.bf16.msra.mxu1 %v2351_v61  ;;  %2360 = vmatpush1.bf16.msra.mxu0 %v2351_v61 }
 0x1ab   : > { %2292 = vmatprep.subr.msk.mxu1 %vm1176_vm9, %v1469_v24  ;;  %2318 = vmatprep.subr.msk.mxu0 %vm1176_vm9, %v1786_v51 }
 0x1ac   : > { %1253 = vmatprep.mubr.f32.mxu0 %v2852_v22  ;;  %1277 = vmatprep.mubr.f32.mxu1 %v2852_v22 }
 0x1ad   : > { %2269 = vmatmul.mubr.msk.f32.gmra.mrb[2].mxu0 %vm1151_vm10, %v1138_v44  ;;  %2273 = vmatmul.mubr.msk.f32.gmra.mrb[2].mxu1 %vm1151_vm10, %v1142_v8 }
 0x1ae   : > { %2293 = vmatpush1.msk.msra.mxu1 %vm1176_vm9, %v1468_v15  ;;  %2319 = vmatpush1.msk.msra.mxu0 %vm1176_vm9, %v1785_v11 }
 0x1af   : > { %1259 = vmatprep.mubr.f32.mxu0 %v2852_v22  ;;  %1283 = vmatprep.mubr.f32.mxu1 %v2852_v22 }
 0x1b1   : > { %2270 = vmatmul.mubr.msk.f32.gmra.mrb[4].mxu0 %vm1151_vm10, %v1139_v43  ;;  %2274 = vmatmul.mubr.msk.f32.gmra.mrb[4].mxu1 %vm1151_vm10, %v1143_v57 }
 0x1b2   : > { %1265 = vmatprep.mubr.f32.mxu0 %v2852_v22  ;;  %1289 = vmatprep.mubr.f32.mxu1 %v2852_v22 }
 0x1b5   : > { %2271 = vmatmul.mubr.msk.f32.gmra.mrb[6].mxu0 %vm1151_vm10, %v1140_v9  ;;  %2275 = vmatmul.mubr.msk.f32.gmra.mrb[6].mxu1 %vm1151_vm10, %v1144_v62 }
 0x1b6   : > { %1564 = vmatprep.mubr.f32.mxu1 %v2852_v22  ;;  %1881 = vmatprep.mubr.f32.mxu0 %v2852_v22 }
 0x1b9   : > { %2294 = vmatmul.mubr.msk.f32.vlgmr.msra.gmra.mrb[8].mxu1 %vm1151_vm10, %v1456_v16  ;;  %2320 = vmatmul.mubr.msk.f32.vlgmr.msra.gmra.mrb[8].mxu0 %vm1151_vm10, %v1773_v23 }
 0x1ba   : > { %1570 = vmatprep.mubr.f32.mxu1 %v2852_v22  ;;  %1887 = vmatprep.mubr.f32.mxu0 %v2852_v22 }
 0x1bd   : > { %2295 = vmatmul.mubr.msk.f32.gmra.mrb[10].mxu1 %vm1151_vm10, %v1457_v41  ;;  %2321 = vmatmul.mubr.msk.f32.gmra.mrb[10].mxu0 %vm1151_vm10, %v1774_v59 }
 0x1be   : > { %1576 = vmatprep.mubr.f32.mxu1 %v2852_v22  ;;  %1893 = vmatprep.mubr.f32.mxu0 %v2852_v22 }
 0x1c1   : > { %2296 = vmatmul.mubr.msk.f32.gmra.mrb[12].mxu1 %vm1151_vm10, %v1458_v37  ;;  %2322 = vmatmul.mubr.msk.f32.gmra.mrb[12].mxu0 %vm1151_vm10, %v1775_v4 }
 0x1c2   : > { %1582 = vmatprep.mubr.f32.mxu1 %v2852_v22  ;;  %1899 = vmatprep.mubr.f32.mxu0 %v2852_v22 }
 0x1c5   : > { %2297 = vmatmul.mubr.msk.f32.gmra.mrb[14].mxu1 %vm1151_vm10, %v1459_v13  ;;  %2323 = vmatmul.mubr.msk.f32.gmra.mrb[14].mxu0 %vm1151_vm10, %v1776_v17 }
 0x1c6   : > { %1588 = vmatprep.mubr.f32.mxu1 %v2852_v22  ;;  %1905 = vmatprep.mubr.f32.mxu0 %v2852_v22 }
 0x1c9   : > { %2298 = vmatmul.mubr.msk.f32.gmra.mrb[16].mxu1 %vm1151_vm10, %v1460_v12  ;;  %2324 = vmatmul.mubr.msk.f32.gmra.mrb[16].mxu0 %vm1151_vm10, %v1777_v10  ;;  %v1296_v10 = vld [vmem:[%s3100_s11] sm:$0xff] }
 0x1ca   : > { %1594 = vmatprep.mubr.f32.mxu1 %v2852_v22  ;;  %1911 = vmatprep.mubr.f32.mxu0 %v2852_v22 }
 0x1cd   : > { %2299 = vmatmul.mubr.msk.f32.gmra.mrb[18].mxu1 %vm1151_vm10, %v1461_v38  ;;  %2325 = vmatmul.mubr.msk.f32.gmra.mrb[18].mxu0 %vm1151_vm10, %v1778_v35 }
 0x1ce   : > { %1600 = vmatprep.mubr.f32.mxu1 %v2852_v22  ;;  %1917 = vmatprep.mubr.f32.mxu0 %v2852_v22 }
 0x1d1   : > { %2300 = vmatmul.mubr.msk.f32.gmra.mrb[20].mxu1 %vm1151_vm10, %v1462_v48  ;;  %2326 = vmatmul.mubr.msk.f32.gmra.mrb[20].mxu0 %vm1151_vm10, %v1779_v39  ;;  %v1304_v48 = vld [vmem:[%s3100_s11 + $0x40] sm:$0xff] }
 0x1d2   : > { %1606 = vmatprep.mubr.f32.mxu1 %v2852_v22  ;;  %1923 = vmatprep.mubr.f32.mxu0 %v2852_v22 }
 0x1d5   : > { %2301 = vmatmul.mubr.msk.f32.gmra.mrb[22].mxu1 %vm1151_vm10, %v1463_v14  ;;  %2327 = vmatmul.mubr.msk.f32.gmra.mrb[22].mxu0 %vm1151_vm10, %v1780_v18 }
 0x27b   : > { %v1249_v31 = vpop.f32.mrb[0].mxu0  ;;  %v1273_v56 = vpop.f32.mrb[0].mxu1 }
 0x27c   : > { %v2276_v49 = vmul.f32 -1.442695, %v1249_v31  ;;  %v2284_v55 = vmul.f32 -1.442695, %v1273_v56  ;;  %v1251_v19 = vpop.f32.mrb[1].mxu0  ;;  %v1275_v3 = vpop.f32.mrb[1].mxu1 }
 0x27d   : > { %v2277_v53 = vmul.f32 -1.442695, %v1251_v19  ;;  %v2285_v22 = vmul.f32 -1.442695, %v1275_v3 }
 0x27e   : > { %2465 = vpow2.f32 %v2276_v49  ;;  %v1297_v49 = vld [vmem:[%s3100_s11 + $0x8] sm:$0xff] }
 0x27f   : > { %2467 = vpow2.f32 %v2284_v55 }
 0x280   : > { %2469 = vpow2.f32 %v2277_v53  ;;  %v1255_v46 = vpop.f32.mrb[2].mxu0  ;;  %v1279_v54 = vpop.f32.mrb[2].mxu1 }
 0x281   : > { %2471 = vpow2.f32 %v2285_v22  ;;  %v2278_v47 = vmul.f32 -1.442695, %v1255_v46  ;;  %v2286_v28 = vmul.f32 -1.442695, %v1279_v54  ;;  %v1257_v1 = vpop.f32.mrb[3].mxu0  ;;  %v1281_v26 = vpop.f32.mrb[3].mxu1 }
 0x282   : > { %v2279_v33 = vmul.f32 -1.442695, %v1257_v1  ;;  %v2287_v42 = vmul.f32 -1.442695, %v1281_v26  ;;  %v1305_v46 = vld [vmem:[%s3100_s11 + $0x48] sm:$0xff] }
 0x283   : > { %2473 = vpow2.f32 %v2278_v47 }
 0x284   : > { %2475 = vpow2.f32 %v2286_v28  ;;  %v1261_v25 = vpop.f32.mrb[4].mxu0  ;;  %v1285_v27 = vpop.f32.mrb[4].mxu1 }
 0x285   : > { %2477 = vpow2.f32 %v2279_v33  ;;  %v2280_v21 = vmul.f32 -1.442695, %v1261_v25  ;;  %v2288_v32 = vmul.f32 -1.442695, %v1285_v27  ;;  %v1263_v20 = vpop.f32.mrb[5].mxu0  ;;  %v1287_v50 = vpop.f32.mrb[5].mxu1 }
 0x286   : > { %2479 = vpow2.f32 %v2287_v42  ;;  %v2281_v52 = vmul.f32 -1.442695, %v1263_v20  ;;  %v2289_v7 = vmul.f32 -1.442695, %v1287_v50  ;;  %v1298_v27 = vld [vmem:[%s3100_s11 + $0x10] sm:$0xff] }
 0x287   : > { %2481 = vpow2.f32 %v2280_v21 }
 0x288   : > { %v2466_v6 = vpop.eup %2465  ;;  %2483 = vpow2.f32 %v2288_v32  ;;  %v1267_v60 = vpop.f32.mrb[6].mxu0 }
 0x289   : > { %v1291_v58 = vpop.f32.mrb[6].mxu1  ;;  %v2468_v34 = vpop.eup %2467  ;;  %v1360_v29 = vadd.f32 1.0, %v2466_v6  ;;  %2485 = vpow2.f32 %v2281_v52  ;;  %v2282_v2 = vmul.f32 -1.442695, %v1267_v60 }
 0x28a   : > { %v1269_v36 = vpop.f32.mrb[7].mxu0  ;;  %v2470_v63 = vpop.eup %2469  ;;  %v1368_v45 = vadd.f32 1.0, %v2468_v34  ;;  %2487 = vpow2.f32 %v2289_v7  ;;  %v2290_v14 = vmul.f32 -1.442695, %v1291_v58  ;;  %v1306_v7 = vld [vmem:[%s3100_s11 + $0x50] sm:$0xff] }
 0x28b   : > { %v1293_v0 = vpop.f32.mrb[7].mxu1  ;;  %v2472_v61 = vpop.eup %2471  ;;  %2489 = vrcp.f32 %v1360_v29  ;;  %v1361_v30 = vadd.f32 1.0, %v2470_v63  ;;  %v2283_v19 = vmul.f32 -1.442695, %v1269_v36  ;;  %v1299_v36 = vld [vmem:[%s3100_s11 + $0x18] sm:$0xff] }
 0x28c   : > { %2491 = vrcp.f32 %v1368_v45  ;;  %v1369_v40 = vadd.f32 1.0, %v2472_v61  ;;  %v1566_v5 = vpop.f32.mrb[8].mxu1  ;;  %v1883_v44 = vpop.f32.mrb[8].mxu0  ;;  %v2291_v54 = vmul.f32 -1.442695, %v1293_v0 }
 0x28d   : > { %v2474_v24 = vpop.eup %2473  ;;  %2493 = vrcp.f32 %v1361_v30  ;;  %v3604_v51 = vpop.f32.mrb[9].mxu1  ;;  %v2302_v26 = vmul.f32 -1.442695, %v1566_v5  ;;  %v2328_v6 = vmul.f32 -1.442695, %v1883_v44 }
 0x28e   : > { %v3606_v8 = vpop.f32.mrb[9].mxu0  ;;  %v2476_v15 = vpop.eup %2475  ;;  %2495 = vrcp.f32 %v1369_v40  ;;  %v1362_v11 = vadd.f32 1.0, %v2474_v24  ;;  %v2303_v45 = vmul.f32 -1.442695, %v3604_v51  ;;  %v1300_v24 = vld [vmem:[%s3100_s11 + $0x20] sm:$0xff] }
 0x28f   : > { %v2478_v43 = vpop.eup %2477  ;;  %v1370_v57 = vadd.f32 1.0, %v2476_v15  ;;  %2497 = vpow2.f32 %v2282_v2  ;;  %v1307_v2 = vld [vmem:[%s3100_s11 + $0x58] sm:$0xff]  ;;  %v2329_v40 = vmul.f32 -1.442695, %v3606_v8 }
 0x290   : > { %v2480_v9 = vpop.eup %2479  ;;  %2499 = vrcp.f32 %v1362_v11  ;;  %v1363_v62 = vadd.f32 1.0, %v2478_v43  ;;  %v3608_v16 = vpop.f32.mrb[10].mxu1 }
 0x291   : > { %v3610_v23 = vpop.f32.mrb[10].mxu0  ;;  %v2482_v41 = vpop.eup %2481  ;;  %2501 = vrcp.f32 %v1370_v57  ;;  %v1371_v59 = vadd.f32 1.0, %v2480_v9  ;;  %v2304_v15 = vmul.f32 -1.442695, %v3608_v16 }
 0x292   : > { %v3612_v37 = vpop.f32.mrb[11].mxu1  ;;  %v2484_v4 = vpop.eup %2483  ;;  %2503 = vrcp.f32 %v1363_v62  ;;  %v1364_v13 = vadd.f32 1.0, %v2482_v41  ;;  %v1308_v62 = vld [vmem:[%s3100_s11 + $0x60] sm:$0xff]  ;;  %v2330_v8 = vmul.f32 -1.442695, %v3610_v23 }
 0x293   : > { %v3614_v17 = vpop.f32.mrb[11].mxu0  ;;  %v2486_v12 = vpop.eup %2485  ;;  %2505 = vrcp.f32 %v1371_v59  ;;  %v1372_v38 = vadd.f32 1.0, %v2484_v4 }
 0x294   : > { %v2488_v35 = vpop.eup %2487  ;;  %2507 = vrcp.f32 %v1364_v13  ;;  %v1365_v39 = vadd.f32 1.0, %v2486_v12  ;;  %v3618_v18 = vpop.f32.mrb[12].mxu1  ;;  %v1301_v12 = vld [vmem:[%s3100_s11 + $0x28] sm:$0xff]  ;;  %v2331_v23 = vmul.f32 -1.442695, %v3614_v17 }
 0x295   : > { %v3620_v31 = vpop.f32.mrb[12].mxu0  ;;  %v2490_v56 = vpop.eup %2489  ;;  %2509 = vrcp.f32 %v1372_v38  ;;  %v1373_v55 = vadd.f32 1.0, %v2488_v35 }
 0x296   : > { %v3623_v3 = vpop.f32.mrb[13].mxu1  ;;  %v2492_v53 = vpop.eup %2491  ;;  %v1408_v22 = vmul.f32 %v2490_v56, %v1296_v10  ;;  %2511 = vrcp.f32 %v1365_v39  ;;  %v1309_v39 = vld [vmem:[%s3100_s11 + $0x68] sm:$0xff] }
 0x297   : > { %v3626_v47 = vpop.f32.mrb[13].mxu0  ;;  %v2494_v28 = vpop.eup %2493  ;;  %v1416_v1 = vmul.f32 %v2492_v53, %v1304_v48  ;;  %2513 = vrcp.f32 %v1373_v55  ;;  %v2306_v55 = vmul.f32 -1.442695, %v3618_v18 }
 0x298   : > { %v2496_v33 = vpop.eup %2495  ;;  %v1424_v42 = vadd.f32 %v1408_v22, %v1296_v10  ;;  %v1409_v25 = vmul.f32 %v2494_v28, %v1297_v49  ;;  %2515 = vpow2.f32 %v2290_v14  ;;  %v3629_v21 = vpop.f32.mrb[14].mxu1  ;;  %v2305_v10 = vmul.f32 -1.442695, %v3612_v37 }
 0x299   : > { %v3631_v32 = vpop.f32.mrb[14].mxu0  ;;  %v2498_v20 = vpop.eup %2497  ;;  %v1432_v50 = vadd.f32 %v1416_v1, %v1304_v48  ;;  %v1417_v52 = vmul.f32 %v2496_v33, %v1305_v46  ;;  %2517 = vpow2.f32 %v2283_v19 }
 0x29a   : > { %v3634_v60 = vpop.f32.mrb[15].mxu1  ;;  %v3636_v58 = vpop.f32.mrb[15].mxu0  ;;  %1440 = vst [vmem:[%s3640_s16] sm:$0xff] %v1424_v42  ;;  %v1425_v29 = vadd.f32 %v1409_v25, %v1297_v49  ;;  %v1366_v63 = vadd.f32 1.0, %v2498_v20  ;;  %2519 = vpow2.f32 %v2291_v54  ;;  %v1302_v20 = vld [vmem:[%s3100_s11 + $0x30] sm:$0xff] }
 0x29b   : > { %v2500_v34 = vpop.eup %2499  ;;  %1448 = vst [vmem:[%s3640_s16 + $0x40] sm:$0xff] %v1432_v50  ;;  %v1433_v61 = vadd.f32 %v1417_v52, %v1305_v46  ;;  %2521 = vpow2.f32 %v2302_v26 }
 0x29c   : > { %v2502_v0 = vpop.eup %2501  ;;  %v1410_v30 = vmul.f32 %v2500_v34, %v1298_v27  ;;  %1441 = vst [vmem:[%s3640_s16 + $0x8] sm:$0xff] %v1425_v29  ;;  %2523 = vrcp.f32 %v1366_v63  ;;  %v3651_v11 = vpop.f32.mrb[16].mxu1  ;;  %v2332_v29 = vmul.f32 -1.442695, %v3620_v31 }
 0x29d   : > { %v2504_v5 = vpop.eup %2503  ;;  %v1418_v44 = vmul.f32 %v2502_v0, %v1306_v7  ;;  %v3653_v51 = vpop.f32.mrb[16].mxu0  ;;  %1449 = vst [vmem:[%s3640_s16 + $0x48] sm:$0xff] %v1433_v61  ;;  %2525 = vpow2.f32 %v2328_v6 }
 0x29e   : > { %v2506_v43 = vpop.eup %2505  ;;  %v1426_v57 = vadd.f32 %v1410_v30, %v1298_v27  ;;  %v1411_v9 = vmul.f32 %v2504_v5, %v1299_v36  ;;  %v3658_v41 = vpop.f32.mrb[17].mxu1  ;;  %2527 = vpow2.f32 %v2303_v45 }
 0x29f   : > { %v3660_v59 = vpop.f32.mrb[17].mxu0  ;;  %v2508_v16 = vpop.eup %2507  ;;  %v1434_v4 = vadd.f32 %v1418_v44, %v1306_v7  ;;  %v1419_v13 = vmul.f32 %v2506_v43, %v1307_v2  ;;  %2529 = vpow2.f32 %v2329_v40 }
 0x2a0   : > { %v2510_v38 = vpop.eup %2509  ;;  %1442 = vst [vmem:[%s3640_s16 + $0x10] sm:$0xff] %v1426_v57  ;;  %v1427_v35 = vadd.f32 %v1411_v9, %v1299_v36  ;;  %v1412_v48 = vmul.f32 %v2508_v16, %v1300_v24  ;;  %2531 = vpow2.f32 %v2304_v15  ;;  %v3669_v19 = vpop.f32.mrb[18].mxu1 }
 0x2a1   : > { %v2512_v14 = vpop.eup %2511  ;;  %1450 = vst [vmem:[%s3640_s16 + $0x50] sm:$0xff] %v1434_v4  ;;  %v1435_v56 = vadd.f32 %v1419_v13, %v1307_v2  ;;  %v1420_v49 = vmul.f32 %v2510_v38, %v1308_v62  ;;  %v3671_v37 = vpop.f32.mrb[18].mxu0  ;;  %2533 = vpow2.f32 %v2330_v8 }
 0x2a2   : > { %v2514_v53 = vpop.eup %2513  ;;  %1443 = vst [vmem:[%s3640_s16 + $0x18] sm:$0xff] %v1427_v35  ;;  %v1428_v22 = vadd.f32 %v1412_v48, %v1300_v24  ;;  %v1413_v46 = vmul.f32 %v2512_v14, %v1301_v12  ;;  %v3674_v17 = vpop.f32.mrb[19].mxu1  ;;  %2535 = vpow2.f32 %v2305_v10  ;;  %v1310_v10 = vld [vmem:[%s3100_s11 + $0x70] sm:$0xff]  ;;  %v1303_v48 = vld [vmem:[%s3100_s11 + $0x38] sm:$0xff] }
 0x2a3   : > { %v3676_v54 = vpop.f32.mrb[19].mxu0  ;;  %v2516_v28 = vpop.eup %2515  ;;  %1451 = vst [vmem:[%s3640_s16 + $0x58] sm:$0xff] %v1435_v56  ;;  %v1436_v1 = vadd.f32 %v1420_v49, %v1308_v62  ;;  %v1421_v18 = vmul.f32 %v2514_v53, %v1309_v39  ;;  %2537 = vpow2.f32 %v2331_v23  ;;  %v2307_v23 = vmul.f32 -1.442695, %v3623_v3  ;;  %v1311_v56 = vld [vmem:[%s3100_s11 + $0x78] sm:$0xff] }
 0x2a4   : > { %v2518_v26 = vpop.eup %2517  ;;  %1444 = vst [vmem:[%s3640_s16 + $0x20] sm:$0xff] %v1428_v22  ;;  %v1429_v33 = vadd.f32 %v1413_v46, %v1301_v12  ;;  %v1374_v42 = vadd.f32 1.0, %v2516_v28  ;;  %2539 = vpow2.f32 %v2306_v55  ;;  %v3682_v52 = vpop.f32.mrb[20].mxu1  ;;  %v2333_v55 = vmul.f32 -1.442695, %v3626_v47  ;;  %v1613_v46 = vld [vmem:[%s3100_s11 + $0x80] sm:$0xff] }
 0x2a5   : > { %v2520_v25 = vpop.eup %2519  ;;  %1452 = vst [vmem:[%s3640_s16 + $0x60] sm:$0xff] %v1436_v1  ;;  %v1437_v27 = vadd.f32 %v1421_v18, %v1309_v39  ;;  %v1367_v50 = vadd.f32 1.0, %v2518_v26  ;;  %v3684_v7 = vpop.f32.mrb[20].mxu0  ;;  %v2308_v28 = vmul.f32 -1.442695, %v3629_v21 }
 0x2a6   : > { %v2522_v6 = vpop.eup %2521  ;;  %1445 = vst [vmem:[%s3640_s16 + $0x28] sm:$0xff] %v1429_v33  ;;  %2541 = vrcp.f32 %v1374_v42  ;;  %v1375_v34 = vadd.f32 1.0, %v2520_v25  ;;  %v3688_v36 = vpop.f32.mrb[21].mxu1  ;;  %v2334_v3 = vmul.f32 -1.442695, %v3631_v32  ;;  %v1930_v25 = vld [vmem:[%s3100_s11 + $0x100] sm:$0xff] }
 0x2a7   : > { %v2524_v63 = vpop.eup %2523  ;;  %1453 = vst [vmem:[%s3640_s16 + $0x68] sm:$0xff] %v1437_v27  ;;  %2543 = vrcp.f32 %v1367_v50  ;;  %v1677_v45 = vadd.f32 1.0, %v2522_v6  ;;  %v3691_v0 = vpop.f32.mrb[21].mxu0  ;;  %v1614_v50 = vld [vmem:[%s3100_s11 + $0x88] sm:$0xff]  ;;  %v2309_v21 = vmul.f32 -1.442695, %v3634_v60 }
 0x2a8   : > { %v2526_v61 = vpop.eup %2525  ;;  %v1414_v30 = vmul.f32 %v2524_v63, %v1302_v20  ;;  %2545 = vrcp.f32 %v1375_v34  ;;  %v3693_v5 = vpop.f32.mrb[22].mxu1  ;;  %v1931_v32 = vld [vmem:[%s3100_s11 + $0x108] sm:$0xff]  ;;  %v2335_v63 = vmul.f32 -1.442695, %v3636_v58  ;;  %v2310_v60 = vmul.f32 -1.442695, %v3651_v11 }
 0x2a9   : > { %v2528_v2 = vpop.eup %2527  ;;  %2547 = vrcp.f32 %v1677_v45  ;;  %v1994_v40 = vadd.f32 1.0, %v2526_v61  ;;  %v3695_v44 = vpop.f32.mrb[22].mxu0 }
 0x2aa   : > { %v2530_v31 = vpop.eup %2529  ;;  %v1430_v24 = vadd.f32 %v1414_v30, %v1302_v20  ;;  %v1678_v15 = vadd.f32 1.0, %v2528_v2  ;;  %2549 = vpow2.f32 %v2332_v29  ;;  %v3697_v43 = vpop.f32.mrb[23].mxu1  ;;  %v1615_v2 = vld [vmem:[%s3100_s11 + $0x90] sm:$0xff] }
 0x2ab   : > { %v3699_v57 = vpop.f32.mrb[23].mxu0  ;;  %v2532_v9 = vpop.eup %2531  ;;  %2551 = vrcp.f32 %v1994_v40  ;;  %v1995_v62 = vadd.f32 1.0, %v2530_v31 }
 0x2ac   : > { %v2534_v8 = vpop.eup %2533  ;;  %1446 = vst [vmem:[%s3640_s16 + $0x30] sm:$0xff] %v1430_v24  ;;  %2553 = vrcp.f32 %v1678_v15  ;;  %v1679_v16 = vadd.f32 1.0, %v2532_v9  ;;  %v1932_v24 = vld [vmem:[%s3100_s11 + $0x110] sm:$0xff]  ;;  %v2336_v15 = vmul.f32 -1.442695, %v3653_v51 }
 0x2ad   : > { %v2536_v4 = vpop.eup %2535  ;;  %2555 = vrcp.f32 %v1995_v62  ;;  %v1996_v13 = vadd.f32 1.0, %v2534_v8  ;;  %v1616_v8 = vld [vmem:[%s3100_s11 + $0x98] sm:$0xff] }
 0x2ae   : > { %v2538_v12 = vpop.eup %2537  ;;  %2557 = vrcp.f32 %v1679_v16  ;;  %v1680_v38 = vadd.f32 1.0, %v2536_v4  ;;  %v2311_v16 = vmul.f32 -1.442695, %v3658_v41 }
 0x2af   : > { %v2540_v35 = vpop.eup %2539  ;;  %2559 = vrcp.f32 %v1996_v13  ;;  %v1997_v39 = vadd.f32 1.0, %v2538_v12  ;;  %v1933_v12 = vld [vmem:[%s3100_s11 + $0x118] sm:$0xff] }
 0x2b0   : > { %v2542_v14 = vpop.eup %2541  ;;  %2561 = vrcp.f32 %v1680_v38  ;;  %v1681_v49 = vadd.f32 1.0, %v2540_v35 }
 0x2b1   : > { %v2544_v53 = vpop.eup %2543  ;;  %v1422_v22 = vmul.f32 %v2542_v14, %v1310_v10  ;;  %2563 = vrcp.f32 %v1997_v39  ;;  %v2312_v39 = vmul.f32 -1.442695, %v3669_v19 }
 0x2b2   : > { %v2546_v1 = vpop.eup %2545  ;;  %v1415_v18 = vmul.f32 %v2544_v53, %v1303_v48  ;;  %2565 = vrcp.f32 %v1681_v49 }
 0x2b3   : > { %v2548_v26 = vpop.eup %2547  ;;  %v1438_v33 = vadd.f32 %v1422_v22, %v1310_v10  ;;  %v1423_v42 = vmul.f32 %v2546_v1, %v1311_v56  ;;  %2567 = vpow2.f32 %v2307_v23  ;;  %v2337_v10 = vmul.f32 -1.442695, %v3660_v59 }
 0x2b4   : > { %v2550_v47 = vpop.eup %2549  ;;  %v1431_v27 = vadd.f32 %v1415_v18, %v1303_v48  ;;  %v1725_v20 = vmul.f32 %v2548_v26, %v1613_v46  ;;  %2569 = vpow2.f32 %v2333_v55  ;;  %v1617_v48 = vld [vmem:[%s3100_s11 + $0xa0] sm:$0xff] }
 0x2b5   : > { %v2552_v6 = vpop.eup %2551  ;;  %1454 = vst [vmem:[%s3640_s16 + $0x70] sm:$0xff] %v1438_v33  ;;  %v1439_v34 = vadd.f32 %v1423_v42, %v1311_v56  ;;  %v1998_v29 = vadd.f32 1.0, %v2550_v47  ;;  %2571 = vpow2.f32 %v2308_v28  ;;  %v2338_v56 = vmul.f32 -1.442695, %v3671_v37 }
 0x2b6   : > { %v2554_v45 = vpop.eup %2553  ;;  %1447 = vst [vmem:[%s3640_s16 + $0x38] sm:$0xff] %v1431_v27  ;;  %v1741_v61 = vadd.f32 %v1725_v20, %v1613_v46  ;;  %v2042_v30 = vmul.f32 %v2552_v6, %v1930_v25  ;;  %2573 = vpow2.f32 %v2334_v3  ;;  %v1934_v3 = vld [vmem:[%s3100_s11 + $0x120] sm:$0xff] }
 0x2b7   : > { %v2556_v40 = vpop.eup %2555  ;;  %1455 = vst [vmem:[%s3640_s16 + $0x78] sm:$0xff] %v1439_v34  ;;  %v1726_v31 = vmul.f32 %v2554_v45, %v1614_v50  ;;  %2575 = vrcp.f32 %v1998_v29 }
 0x2b8   : > { %v2558_v9 = vpop.eup %2557  ;;  %1757 = vst [vmem:[%s3640_s16 + $0x80] sm:$0xff] %v1741_v61  ;;  %v2058_v58 = vadd.f32 %v2042_v30, %v1930_v25  ;;  %v2043_v62 = vmul.f32 %v2556_v40, %v1931_v32  ;;  %2577 = vpow2.f32 %v2309_v21  ;;  %v2313_v25 = vmul.f32 -1.442695, %v3674_v17  ;;  %v1618_v40 = vld [vmem:[%s3100_s11 + $0xa8] sm:$0xff] }
 0x2b9   : > { %v2560_v11 = vpop.eup %2559  ;;  %v1742_v4 = vadd.f32 %v1726_v31, %v1614_v50  ;;  %v1727_v13 = vmul.f32 %v2558_v9, %v1615_v2  ;;  %2579 = vpow2.f32 %v2335_v63 }
 0x2ba   : > { %v2562_v38 = vpop.eup %2561  ;;  %2074 = vst [vmem:[%s3640_s16 + $0x100] sm:$0xff] %v2058_v58  ;;  %v2059_v51 = vadd.f32 %v2043_v62, %v1931_v32  ;;  %v2044_v35 = vmul.f32 %v2560_v11, %v1932_v24  ;;  %2581 = vpow2.f32 %v2310_v60  ;;  %v2339_v58 = vmul.f32 -1.442695, %v3676_v54 }
 0x2bb   : > { %v2564_v23 = vpop.eup %2563  ;;  %1758 = vst [vmem:[%s3640_s16 + $0x88] sm:$0xff] %v1742_v4  ;;  %v1743_v41 = vadd.f32 %v1727_v13, %v1615_v2  ;;  %v1728_v14 = vmul.f32 %v2562_v38, %v1616_v8  ;;  %2583 = vpow2.f32 %v2336_v15  ;;  %v1935_v15 = vld [vmem:[%s3100_s11 + $0x128] sm:$0xff]  ;;  %v2314_v11 = vmul.f32 -1.442695, %v3682_v52 }
 0x2bc   : > { %v2566_v49 = vpop.eup %2565  ;;  %2075 = vst [vmem:[%s3640_s16 + $0x108] sm:$0xff] %v2059_v51  ;;  %v2060_v59 = vadd.f32 %v2044_v35, %v1932_v24  ;;  %v2045_v55 = vmul.f32 %v2564_v23, %v1933_v12  ;;  %2585 = vpow2.f32 %v2311_v16  ;;  %v2315_v54 = vmul.f32 -1.442695, %v3688_v36  ;;  %v1620_v23 = vld [vmem:[%s3100_s11 + $0xb8] sm:$0xff]  ;;  %v1621_v36 = vld [vmem:[%s3100_s11 + $0xc0] sm:$0xff] }
 0x2bd   : > { %v2568_v53 = vpop.eup %2567  ;;  %1759 = vst [vmem:[%s3640_s16 + $0x90] sm:$0xff] %v1743_v41  ;;  %v1744_v22 = vadd.f32 %v1728_v14, %v1616_v8  ;;  %v1729_v19 = vmul.f32 %v2566_v49, %v1617_v48  ;;  %2587 = vpow2.f32 %v2337_v10  ;;  %v1619_v8 = vld [vmem:[%s3100_s11 + $0xb0] sm:$0xff]  ;;  %v2340_v10 = vmul.f32 -1.442695, %v3684_v7 }
 0x2be   : > { %v2570_v46 = vpop.eup %2569  ;;  %2076 = vst [vmem:[%s3640_s16 + $0x110] sm:$0xff] %v2060_v59  ;;  %v2061_v28 = vadd.f32 %v2045_v55, %v1933_v12  ;;  %v1682_v1 = vadd.f32 1.0, %v2568_v53  ;;  %2589 = vpow2.f32 %v2312_v39  ;;  %v1936_v12 = vld [vmem:[%s3100_s11 + $0x130] sm:$0xff]  ;;  %v2341_v7 = vmul.f32 -1.442695, %v3691_v0 }
 0x2bf   : > { %v2572_v37 = vpop.eup %2571  ;;  %1760 = vst [vmem:[%s3640_s16 + $0x98] sm:$0xff] %v1744_v22  ;;  %v1745_v18 = vadd.f32 %v1729_v19, %v1617_v48  ;;  %v1999_v26 = vadd.f32 1.0, %v2570_v46  ;;  %2591 = vpow2.f32 %v2338_v56  ;;  %v1937_v56 = vld [vmem:[%s3100_s11 + $0x138] sm:$0xff]  ;;  %v2316_v53 = vmul.f32 -1.442695, %v3693_v5 }
 0x2c0   : > { %v2574_v33 = vpop.eup %2573  ;;  %2077 = vst [vmem:[%s3640_s16 + $0x118] sm:$0xff] %v2061_v28  ;;  %2593 = vrcp.f32 %v1682_v1  ;;  %v1683_v42 = vadd.f32 1.0, %v2572_v37  ;;  %v1938_v28 = vld [vmem:[%s3100_s11 + $0x140] sm:$0xff]  ;;  %v2342_v0 = vmul.f32 -1.442695, %v3695_v44 }
 0x2c1   : > { %v2576_v47 = vpop.eup %2575  ;;  %1761 = vst [vmem:[%s3640_s16 + $0xa0] sm:$0xff] %v1745_v18  ;;  %2595 = vrcp.f32 %v1999_v26  ;;  %v2000_v27 = vadd.f32 1.0, %v2574_v33  ;;  %v1622_v18 = vld [vmem:[%s3100_s11 + $0xc8] sm:$0xff] }
 0x2c2   : > { %v2578_v20 = vpop.eup %2577  ;;  %v2046_v50 = vmul.f32 %v2576_v47, %v1934_v3  ;;  %2597 = vrcp.f32 %v1683_v42  ;;  %v1939_v42 = vld [vmem:[%s3100_s11 + $0x148] sm:$0xff] }
 0x2c3   : > { %v2580_v21 = vpop.eup %2579  ;;  %2599 = vrcp.f32 %v2000_v27  ;;  %v1684_v6 = vadd.f32 1.0, %v2578_v20  ;;  %v1623_v20 = vld [vmem:[%s3100_s11 + $0xd0] sm:$0xff] }
 0x2c4   : > { %v2582_v34 = vpop.eup %2581  ;;  %v2062_v32 = vadd.f32 %v2046_v50, %v1934_v3  ;;  %v2001_v29 = vadd.f32 1.0, %v2580_v21  ;;  %2601 = vpow2.f32 %v2313_v25  ;;  %v2317_v3 = vmul.f32 -1.442695, %v3697_v43 }
 0x2c5   : > { %v2584_v63 = vpop.eup %2583  ;;  %2603 = vrcp.f32 %v1684_v6  ;;  %v1685_v17 = vadd.f32 1.0, %v2582_v34  ;;  %v2343_v25 = vmul.f32 -1.442695, %v3699_v57  ;;  %v1940_v6 = vld [vmem:[%s3100_s11 + $0x150] sm:$0xff] }
 0x2c6   : > { %v2586_v45 = vpop.eup %2585  ;;  %2078 = vst [vmem:[%s3640_s16 + $0x120] sm:$0xff] %v2062_v32  ;;  %2605 = vrcp.f32 %v2001_v29  ;;  %v2002_v61 = vadd.f32 1.0, %v2584_v63 }
 0x2c7   : > { %v2588_v30 = vpop.eup %2587  ;;  %2607 = vrcp.f32 %v1685_v17  ;;  %v1686_v2 = vadd.f32 1.0, %v2586_v45 }
 0x2c8   : > { %v2590_v60 = vpop.eup %2589  ;;  %2609 = vrcp.f32 %v2002_v61  ;;  %v2003_v31 = vadd.f32 1.0, %v2588_v30 }
 0x2c9   : > { %v2592_v24 = vpop.eup %2591  ;;  %2611 = vrcp.f32 %v1686_v2  ;;  %v1687_v9 = vadd.f32 1.0, %v2590_v60 }
 0x2ca   : > { %v2594_v62 = vpop.eup %2593  ;;  %2613 = vrcp.f32 %v2003_v31  ;;  %v2004_v16 = vadd.f32 1.0, %v2592_v24 }
 0x2cb   : > { %v2596_v4 = vpop.eup %2595  ;;  %v1730_v13 = vmul.f32 %v2594_v62, %v1618_v40  ;;  %2615 = vrcp.f32 %v1687_v9 }
 0x2cc   : > { %v2598_v38 = vpop.eup %2597  ;;  %v2047_v51 = vmul.f32 %v2596_v4, %v1935_v15  ;;  %2617 = vrcp.f32 %v2004_v16 }
 0x2cd   : > { %v2600_v35 = vpop.eup %2599  ;;  %v1746_v48 = vadd.f32 %v1730_v13, %v1618_v40  ;;  %v1731_v39 = vmul.f32 %v2598_v38, %v1619_v8  ;;  %2619 = vpow2.f32 %v2339_v58 }
 0x2ce   : > { %v2602_v52 = vpop.eup %2601  ;;  %v2063_v41 = vadd.f32 %v2047_v51, %v1935_v15  ;;  %v2048_v14 = vmul.f32 %v2600_v35, %v1936_v12  ;;  %2621 = vpow2.f32 %v2314_v11  ;;  %v1624_v15 = vld [vmem:[%s3100_s11 + $0xd8] sm:$0xff] }
 0x2cf   : > { %v2604_v49 = vpop.eup %2603  ;;  %1762 = vst [vmem:[%s3640_s16 + $0xa8] sm:$0xff] %v1746_v48  ;;  %v1747_v59 = vadd.f32 %v1731_v39, %v1619_v8  ;;  %v1688_v55 = vadd.f32 1.0, %v2602_v52  ;;  %2623 = vpow2.f32 %v2340_v10  ;;  %v1941_v52 = vld [vmem:[%s3100_s11 + $0x158] sm:$0xff] }
 0x2d0   : > { %v2606_v22 = vpop.eup %2605  ;;  %2079 = vst [vmem:[%s3640_s16 + $0x128] sm:$0xff] %v2063_v41  ;;  %v2064_v19 = vadd.f32 %v2048_v14, %v1936_v12  ;;  %v1732_v46 = vmul.f32 %v2604_v49, %v1620_v23  ;;  %2625 = vpow2.f32 %v2315_v54  ;;  %v1625_v41 = vld [vmem:[%s3100_s11 + $0xe0] sm:$0xff] }
 0x2d1   : > { %v2608_v1 = vpop.eup %2607  ;;  %1763 = vst [vmem:[%s3640_s16 + $0xb0] sm:$0xff] %v1747_v59  ;;  %v2049_v37 = vmul.f32 %v2606_v22, %v1937_v56  ;;  %2627 = vrcp.f32 %v1688_v55  ;;  %v1626_v59 = vld [vmem:[%s3100_s11 + $0xe8] sm:$0xff] }
 0x2d2   : > { %v2610_v26 = vpop.eup %2609  ;;  %2080 = vst [vmem:[%s3640_s16 + $0x130] sm:$0xff] %v2064_v19  ;;  %v1748_v5 = vadd.f32 %v1732_v46, %v1620_v23  ;;  %v1733_v33 = vmul.f32 %v2608_v1, %v1621_v36  ;;  %2629 = vpow2.f32 %v2341_v7  ;;  %v1943_v46 = vld [vmem:[%s3100_s11 + $0x168] sm:$0xff]  ;;  %v1627_v1 = vld [vmem:[%s3100_s11 + $0xf0] sm:$0xff] }
 0x2d3   : > { %v2612_v44 = vpop.eup %2611  ;;  %v2065_v47 = vadd.f32 %v2049_v37, %v1937_v56  ;;  %v2050_v27 = vmul.f32 %v2610_v26, %v1938_v28  ;;  %2631 = vpow2.f32 %v2316_v53  ;;  %v1942_v56 = vld [vmem:[%s3100_s11 + $0x160] sm:$0xff] }
 0x2d4   : > { %v2614_v50 = vpop.eup %2613  ;;  %1764 = vst [vmem:[%s3640_s16 + $0xb8] sm:$0xff] %v1748_v5  ;;  %v1749_v43 = vadd.f32 %v1733_v33, %v1621_v36  ;;  %v1734_v21 = vmul.f32 %v2612_v44, %v1622_v18  ;;  %2633 = vpow2.f32 %v2342_v0 }
 0x2d5   : > { %v2616_v34 = vpop.eup %2615  ;;  %2081 = vst [vmem:[%s3640_s16 + $0x138] sm:$0xff] %v2065_v47  ;;  %v2066_v32 = vadd.f32 %v2050_v27, %v1938_v28  ;;  %v2051_v29 = vmul.f32 %v2614_v50, %v1939_v42  ;;  %2635 = vpow2.f32 %v2317_v3  ;;  %v1944_v3 = vld [vmem:[%s3100_s11 + $0x170] sm:$0xff]  ;;  %v1945_v47 = vld [vmem:[%s3100_s11 + $0x178] sm:$0xff] }
 0x2d6   : > { %v2618_v57 = vpop.eup %2617  ;;  %1765 = vst [vmem:[%s3640_s16 + $0xc0] sm:$0xff] %v1749_v43  ;;  %v1750_v63 = vadd.f32 %v1734_v21, %v1622_v18  ;;  %v1735_v17 = vmul.f32 %v2616_v34, %v1623_v20  ;;  %2637 = vpow2.f32 %v2343_v25 }
 0x2d7   : > { %v2620_v45 = vpop.eup %2619  ;;  %2082 = vst [vmem:[%s3640_s16 + $0x140] sm:$0xff] %v2066_v32  ;;  %v2067_v61 = vadd.f32 %v2051_v29, %v1939_v42  ;;  %v2052_v30 = vmul.f32 %v2618_v57, %v1940_v6  ;;  %v1628_v42 = vld [vmem:[%s3100_s11 + $0xf8] sm:$0xff] }
 0x2d8   : > { %v2622_v2 = vpop.eup %2621  ;;  %1766 = vst [vmem:[%s3640_s16 + $0xc8] sm:$0xff] %v1750_v63  ;;  %v1751_v60 = vadd.f32 %v1735_v17, %v1623_v20  ;;  %v2005_v40 = vadd.f32 1.0, %v2620_v45 }
 0x2d9   : > { %v2624_v31 = vpop.eup %2623  ;;  %2083 = vst [vmem:[%s3640_s16 + $0x148] sm:$0xff] %v2067_v61  ;;  %v2068_v24 = vadd.f32 %v2052_v30, %v1940_v6  ;;  %v1689_v9 = vadd.f32 1.0, %v2622_v2 }
 0x2da   : > { %v2626_v58 = vpop.eup %2625  ;;  %1767 = vst [vmem:[%s3640_s16 + $0xd0] sm:$0xff] %v1751_v60  ;;  %2639 = vrcp.f32 %v2005_v40  ;;  %v2006_v62 = vadd.f32 1.0, %v2624_v31 }
 0x2db   : > { %v2628_v8 = vpop.eup %2627  ;;  %2084 = vst [vmem:[%s3640_s16 + $0x150] sm:$0xff] %v2068_v24  ;;  %2641 = vrcp.f32 %v1689_v9  ;;  %v1690_v16 = vadd.f32 1.0, %v2626_v58 }
 0x2dc   : > { %v2630_v11 = vpop.eup %2629  ;;  %v1736_v4 = vmul.f32 %v2628_v8, %v1624_v15  ;;  %2643 = vrcp.f32 %v2006_v62 }
 0x2dd   : > { %v2632_v13 = vpop.eup %2631  ;;  %2645 = vrcp.f32 %v1690_v16  ;;  %v2007_v12 = vadd.f32 1.0, %v2630_v11 }
 0x2de   : > { %v2634_v10 = vpop.eup %2633  ;;  %v1752_v38 = vadd.f32 %v1736_v4, %v1624_v15  ;;  %v1691_v51 = vadd.f32 1.0, %v2632_v13 }
 0x2df   : > { %v2636_v54 = vpop.eup %2635  ;;  %2647 = vrcp.f32 %v2007_v12  ;;  %v2008_v35 = vadd.f32 1.0, %v2634_v10 }
 0x2e0   : > { %v2638_v48 = vpop.eup %2637  ;;  %1768 = vst [vmem:[%s3640_s16 + $0xd8] sm:$0xff] %v1752_v38  ;;  %2649 = vrcp.f32 %v1691_v51  ;;  %v1692_v39 = vadd.f32 1.0, %v2636_v54 }
 0x2e1   : > { %2651 = vrcp.f32 %v2008_v35  ;;  %v2009_v23 = vadd.f32 1.0, %v2638_v48 }
 0x2e2   : > { %2653 = vrcp.f32 %v1692_v39 }
 0x2e3   : > { %2655 = vrcp.f32 %v2009_v23 }
 0x2e4   : > { %v2640_v14 = vpop.eup %2639 }
 0x2e5   : > { %v2642_v7 = vpop.eup %2641  ;;  %v2053_v49 = vmul.f32 %v2640_v14, %v1941_v52 }
 0x2e6   : > { %v2644_v36 = vpop.eup %2643  ;;  %v1737_v55 = vmul.f32 %v2642_v7, %v1625_v41 }
 0x2e7   : > { %v2646_v53 = vpop.eup %2645  ;;  %v2069_v22 = vadd.f32 %v2053_v49, %v1941_v52  ;;  %v2054_v19 = vmul.f32 %v2644_v36, %v1942_v56 }
 0x2e8   : > { %v1753_v28 = vadd.f32 %v1737_v55, %v1625_v41  ;;  %v1738_v0 = vmul.f32 %v2646_v53, %v1626_v59 }
 0x2e9   : > { %v2648_v37 = vpop.eup %2647  ;;  %2085 = vst [vmem:[%s3640_s16 + $0x158] sm:$0xff] %v2069_v22  ;;  %v2070_v18 = vadd.f32 %v2054_v19, %v1942_v56 }
 0x2ea   : > { %v2650_v26 = vpop.eup %2649  ;;  %1769 = vst [vmem:[%s3640_s16 + $0xe0] sm:$0xff] %v1753_v28  ;;  %v1754_v5 = vadd.f32 %v1738_v0, %v1626_v59  ;;  %v2055_v33 = vmul.f32 %v2648_v37, %v1943_v46 }
 0x2eb   : > { %v2652_v25 = vpop.eup %2651  ;;  %2086 = vst [vmem:[%s3640_s16 + $0x160] sm:$0xff] %v2070_v18  ;;  %v1739_v44 = vmul.f32 %v2650_v26, %v1627_v1 }
 0x2ec   : > { %v2654_v27 = vpop.eup %2653  ;;  %1770 = vst [vmem:[%s3640_s16 + $0xe8] sm:$0xff] %v1754_v5  ;;  %v2071_v20 = vadd.f32 %v2055_v33, %v1943_v46  ;;  %v2056_v50 = vmul.f32 %v2652_v25, %v1944_v3 }
 0x2ed   : > { %v2656_v43 = vpop.eup %2655  ;;  %v1755_v21 = vadd.f32 %v1739_v44, %v1627_v1  ;;  %v1740_v6 = vmul.f32 %v2654_v27, %v1628_v42 }
 0x2ee   : > { %2087 = vst [vmem:[%s3640_s16 + $0x168] sm:$0xff] %v2071_v20  ;;  %v2072_v34 = vadd.f32 %v2056_v50, %v1944_v3  ;;  %v2057_v32 = vmul.f32 %v2656_v43, %v1945_v47 }
 0x2ef   : > { %1771 = vst [vmem:[%s3640_s16 + $0xf0] sm:$0xff] %v1755_v21  ;;  %v1756_v29 = vadd.f32 %v1740_v6, %v1628_v42 }
 0x2f0   : > { %2088 = vst [vmem:[%s3640_s16 + $0x170] sm:$0xff] %v2072_v34  ;;  %v2073_v57 = vadd.f32 %v2057_v32, %v1945_v47 }
 0x2f1   : > { %1772 = vst [vmem:[%s3640_s16 + $0xf8] sm:$0xff] %v1756_v29 }
 0x2f2   : > { %2089 = vst [vmem:[%s3640_s16 + $0x178] sm:$0xff] %v2073_v57 }
 0x2f3   : > { %2760 = shalt.err (!%p2757_p13)
}
 0x2f4   : > { %s2761_s24 = scalar_lea.hbm %s3796_s21, 6144  ;;  %s2765_s13 = scalar_lea.hbm %s3856_s5, 12288 }
 0x2f5   : > { %p2762_p11 = scmp.ne.s32.totalorder %s3796_s21, %s2761_s24  ;;  %p2766_p5 = scmp.lt.u32.totalorder %s3796_s21, %s3856_s5 }
 0x2f6   : > { %p2767_p2 = scmp.lt.u32.totalorder %s2765_s13, %s2761_s24  ;;  %p2769_p0 = scmp.lt.u32.totalorder %s2761_s24, %s3796_s21 }
 0x2f7   : > { %p2763_p7 = pnand %p2762_p11, %p3892_p6 }
 0x2f8   : > { %p2768_p1 = por %p2767_p2, %p2766_p5 }
 0x2f9   : > { %p2764_p3 = pneg %p2763_p7 }
 0x2fa   : > { %p2770_p8 = por %p2769_p0, %p2768_p1 }
 0x2fc   : > { %p2771_p9 = pnand %p2770_p8, %p2764_p3 }
 0x2fe   : > { %2774 = shalt.err (!%p2771_p9)
}
 0x2ff   : > { %s2854_s10 = smov 256  }
 0x300   : > { %2380 = dma.vmem_to_hbm [thread:$0]  (%p3892_p6), %s3799_s26, 6144, %s3796_s21, %s2091_s22, %s2854_s10, %s2854_s10, %s2850_s7  }
 0x301 PF: > { %s3893_s1 = sld [smem:[#allocation16_spill]]  ;;  %s2121_s20 = sand.u32 1, %s2813_s18  }
 0x302   : > { %p3894_p12 = scmp.ne.s32.totalorder %s3879_s8, 0  ;;  %s2122_s16 = scalar_lea.sflag [#allocation6], %s2121_s20 }
 0x307   : > { %p3895_p4 = scmp.ge.s32.totalorder %s3893_s1, 2 }
 0x309   : > { %p2393_p10 = pnand %p3895_p4, %p3894_p12 }
 0x30b   : > { %2808 = dma.done.wait (!%p2393_p10), %s2122_s16, 6144  }
 0x30c   : > { %2810 = vsyncadd (!%p2393_p10), %s2122_s16, 4294961152  ;;  %s24_s23 = sadd.s32 1, %s3893_s1   ;;  %s3896_s6 = sld [smem:[#allocation14_spill]] }
 0x30d   : > { %p21_p13 = scmp.ge.s32.totalorder %s24_s23, 4   ;;  %s3897_s20 = sld [smem:[#allocation18_spill]] }
 0x30e   : > { %s3898_s21 = sld [smem:[#allocation15_spill]]  ;;  %s3899_s22 = sld [smem:[#allocation17_spill]] }
 0x30f   : > { %s3900_s18 = smov %s2817_s19  ;;  %23 = sbr.rel (!%p21_p13) target bundleno = 10 (0xa), region = 115 }
 0x312   : > { %s3901_s19 = smov %s3896_s6 }
 0x316   :  { %2127 = vsyncpa [#allocation5], 1 }
 0x317   :  { %2129 = vsyncpa [#allocation5 + $0x1], 1 }
 0x318   :  { %2130 = vsyncpa [#allocation8], 1 }
 0x319   :  { %2132 = vsyncpa [#allocation8 + $0x1], 1 }
 0x31a   :  { %2133 = vsyncpa [#allocation6], 1 }
 0x31b   :  { %2135 = vsyncpa [#allocation6 + $0x1], 1 }

</bundles_post_ra>
